<compile_context>
chip_gen: v7x
topology: tpu7x:2x2x1
jax: 0.10.0
libtpu: 0.0.40
codegen_flags: <defaults>
</compile_context>

<pallas_src>
import functools

import jax
import jax.numpy as jnp
from jax.experimental import pallas as pl
from jax.experimental.pallas import tpu as pltpu

BN_EPS = 1e-5
LEAKY_SLOPE = 0.01  # nn.LeakyReLU() default negative_slope


# ----------------------------------------------------------------------------
# Pallas kernel: fused 3x3 / stride-2 conv + folded-BN bias + LeakyReLU
# ----------------------------------------------------------------------------
def _downsample_kernel(xph_ref, w_ref, bias_ref, o_ref, *, ho, wo):
    """One batch image per grid step.

    xph_ref : (4, ho+1, wo+1, Cin) bf16  stride-2 phases of the reflect-padded image
    w_ref   : (9, Cin, Cout)       bf16  BN-scale-folded conv weights, tap-major
    bias_ref: (1, Cout)            f32   folded BN bias
    o_ref   : (1, ho*wo, Cout)     f32   lane-dense output slab
    """
    cin = w_ref.shape[1]
    cout = w_ref.shape[2]
    acc = jnp.zeros((ho * wo, cout), jnp.float32)
    # Tap (ky, kx) of the 3x3/stride-2 conv reads phase (ky%2, kx%2) shifted by
    # (ky//2, kx//2).  All slices are static; the full K reduction (9 taps x Cin)
    # happens inside this single invocation -> no k grid axis, no pl.when.
    for ky in range(3):
        for kx in range(3):
            p = (ky % 2) * 2 + (kx % 2)
            oy0, ox0 = ky // 2, kx // 2
            tap = xph_ref[p, oy0:oy0 + ho, ox0:ox0 + wo, :]       # (ho, wo, Cin) bf16
            tap2d = tap.reshape(ho * wo, cin)                     # layout-preserving
            acc = acc + jnp.dot(tap2d, w_ref[ky * 3 + kx],
                                preferred_element_type=jnp.float32)
    y = acc + bias_ref[...]                        # (1, Cout) broadcast, f32 epilogue
    y = jnp.where(y >= 0.0, y, LEAKY_SLOPE * y)    # LeakyReLU
    o_ref[0] = y.astype(o_ref.dtype)


# ----------------------------------------------------------------------------
# Wrapper: NCHW in / NCHW out, BN fold, stride-2 phase split, pallas_call
# ----------------------------------------------------------------------------
def downsample_forward(params, x_nchw):
    """DownSample forward: (N, C, H, W) f32 -> (N, C, Ho, Wo) f32."""
    w = params["w"]                                           # (3, 3, Cin, Cout) HWIO
    scale = params["gamma"] * jax.lax.rsqrt(params["var"] + BN_EPS)
    bias = params["beta"] - params["mean"] * scale
    cin, cout = w.shape[2], w.shape[3]
    # Fold the BN scale into the weight columns once (constant under jit).
    w_mat = (w * scale[None, None, None, :]).astype(jnp.bfloat16).reshape(9, cin, cout)
    bias2d = bias.reshape(1, cout).astype(jnp.float32)

    n, c, h, wdt = x_nchw.shape
    assert c == cin, (c, cin)
    assert h >= 2 and wdt >= 2, "reflect padding requires spatial dims >= 2"
    ho = (h - 1) // 2 + 1
    wo = (wdt - 1) // 2 + 1
    hh, wh = ho + 1, wo + 1

    x = jnp.transpose(x_nchw, (0, 2, 3, 1)).astype(jnp.bfloat16)   # NCHW -> NHWC, bf16
    xp = jnp.pad(x, ((0, 0), (1, 1), (1, 1), (0, 0)), mode="reflect")

    # Split the padded image into its 4 stride-2 phases (single space-to-depth
    # copy) so every tap is a contiguous window inside the kernel.  Zero-padding
    # of a phase (odd spatial sizes) is never read by any valid tap.
    phases = []
    for py in range(2):
        for px in range(2):
            ph = xp[:, py::2, px::2, :][:, :hh, :wh, :]
            ph = jnp.pad(ph, ((0, 0), (0, hh - ph.shape[1]),
                              (0, wh - ph.shape[2]), (0, 0)))
            phases.append(ph)
    xph = jnp.stack(phases, axis=1).reshape(n * 4, hh, wh, cin)

    # NOTE: whole-image-per-batch blocks are tiny here (<1.5 MiB/step); for very
    # large spatial sizes one would additionally tile output rows with a halo.
    out = pl.pallas_call(
        functools.partial(_downsample_kernel, ho=ho, wo=wo),
        out_shape=jax.ShapeDtypeStruct((n, ho * wo, cout), jnp.float32),
        grid_spec=pltpu.PrefetchScalarGridSpec(
            num_scalar_prefetch=0,
            grid=(n,),
            in_specs=[
                pl.BlockSpec((4, hh, wh, cin), lambda b: (b, 0, 0, 0)),
                pl.BlockSpec((9, cin, cout), lambda b: (0, 0, 0)),
                pl.BlockSpec((1, cout), lambda b: (0, 0)),
            ],
            out_specs=pl.BlockSpec((1, ho * wo, cout), lambda b: (b, 0, 0)),
        ),
        compiler_params=pltpu.CompilerParams(
            dimension_semantics=("parallel",)),
    )(xph, w_mat, bias2d)

    y = out.reshape(n, ho, wo, cout)
    return jnp.transpose(y, (0, 3, 1, 2))   # NHWC -> NCHW


# ----------------------------------------------------------------------------
# Pure-JAX reference (same bf16 operand rounding, f32 accumulation)
# ----------------------------------------------------------------------------
def _reference_forward(params, x_nchw):
    scale = params["gamma"] * jax.lax.rsqrt(params["var"] + BN_EPS)
    bias = params["beta"] - params["mean"] * scale
    w = (params["w"] * scale[None, None, None, :]).astype(jnp.bfloat16).astype(jnp.float32)
    x = jnp.transpose(x_nchw, (0, 2, 3, 1)).astype(jnp.bfloat16).astype(jnp.float32)
    xp = jnp.pad(x, ((0, 0), (1, 1), (1, 1), (0, 0)), mode="reflect")
    y = jax.lax.conv_general_dilated(
        xp, w, window_strides=(2, 2), padding="VALID",
        dimension_numbers=("NHWC", "HWIO", "NHWC"),
        preferred_element_type=jnp.float32)
    y = y + bias[None, None, None, :]
    y = jnp.where(y >= 0.0, y, LEAKY_SLOPE * y)
    return jnp.transpose(y, (0, 3, 1, 2))


# ----------------------------------------------------------------------------
# Deterministic parameter initialization (HWIO conv weight + BN stats)
# ----------------------------------------------------------------------------
def init_downsample_params(key, channel):
    kw, kg, kb, km, kv = jax.random.split(key, 5)
    return dict(
        w=jax.random.normal(kw, (3, 3, channel, channel), jnp.float32)
          * jnp.sqrt(2.0 / (9 * channel)),
        gamma=1.0 + 0.1 * jax.random.normal(kg, (channel,), jnp.float32),
        beta=0.1 * jax.random.normal(kb, (channel,), jnp.float32),
        mean=0.1 * jax.random.normal(km, (channel,), jnp.float32),
        var=0.5 + jax.random.uniform(kv, (channel,), jnp.float32),
    )


# ----------------------------------------------------------------------------
if __name__ == "__main__":
    key = jax.random.PRNGKey(0)
    kp, kx = jax.random.split(key)

    channel = 128                     # lane-friendly, typical UNet DownSample width
    params = init_downsample_params(kp, channel)
    x = jax.random.normal(kx, (2, channel, 32, 32), jnp.float32)   # NCHW

    fwd = jax.jit(downsample_forward)
    y = jax.block_until_ready(fwd(params, x))

    assert y.shape == (2, channel, 16, 16), y.shape
    assert bool(jnp.all(jnp.isfinite(y)))

    ref = jax.block_until_ready(jax.jit(_reference_forward)(params, x))
    err = float(jnp.max(jnp.abs(y - ref)))
    assert err < 1e-2, f"max abs error vs reference: {err}"

    print("KERNEL_OK")
</pallas_src>

<mosaic_0001>
module attributes {stable_mosaic.version = 11 : i64} {
  func.func @_downsample_kernel(%arg0: i32, %arg1: memref<4x17x17x128xbf16, #tpu.memory_space<vmem>>, %arg2: memref<9x128x128xbf16, #tpu.memory_space<vmem>>, %arg3: memref<1x128xf32, #tpu.memory_space<vmem>>, %arg4: memref<1x256x128xf32, #tpu.memory_space<vmem>>) attributes {dimension_semantics = [#tpu.dimension_semantics<parallel>], iteration_bounds = array<i64: 2>, scalar_prefetch = 0 : i64, scratch_operands = 0 : i64, tpu.core_type = #tpu.core_type<tc>, window_params = [{transform_indices = @transform_0, window_bounds = array<i64: 4, 17, 17, 128>}, {pipeline_mode = #tpu.pipeline_mode<synchronous>, transform_indices = @transform_1, window_bounds = array<i64: 9, 128, 128>}, {pipeline_mode = #tpu.pipeline_mode<synchronous>, transform_indices = @transform_2, window_bounds = array<i64: 1, 128>}, {transform_indices = @transform_3, window_bounds = array<i64: 1, 256, 128>}]} {
    %cst = arith.constant 0.000000e+00 : f32
    %0 = vector.broadcast %cst : f32 to vector<256x128xf32>
    %c0 = arith.constant 0 : index
    %c0_0 = arith.constant 0 : index
    %c0_1 = arith.constant 0 : index
    %c0_2 = arith.constant 0 : index
    %1 = vector.load %arg1[%c0, %c0_0, %c0_1, %c0_2] : memref<4x17x17x128xbf16, #tpu.memory_space<vmem>>, vector<1x16x16x128xbf16>
    %2 = vector.shape_cast %1 : vector<1x16x16x128xbf16> to vector<16x16x128xbf16>
    %3 = vector.shape_cast %2 : vector<16x16x128xbf16> to vector<256x128xbf16>
    %c0_3 = arith.constant 0 : index
    %c0_4 = arith.constant 0 : index
    %c0_5 = arith.constant 0 : index
    %4 = vector.load %arg2[%c0_3, %c0_4, %c0_5] : memref<9x128x128xbf16, #tpu.memory_space<vmem>>, vector<1x128x128xbf16>
    %5 = vector.shape_cast %4 : vector<1x128x128xbf16> to vector<128x128xbf16>
    %cst_6 = arith.constant dense<0.000000e+00> : vector<256x128xf32>
    %6 = tpu.matmul %3, %5, %cst_6 {dimension_numbers = #tpu.dot_dimension_numbers<[1], [0], [0], [1], [0, 0, 1, 1], [], []>} : vector<256x128xbf16>, vector<128x128xbf16>, vector<256x128xf32> -> vector<256x128xf32>
    %7 = arith.addf %0, %6 : vector<256x128xf32>
    %c1 = arith.constant 1 : index
    %c0_7 = arith.constant 0 : index
    %c0_8 = arith.constant 0 : index
    %c0_9 = arith.constant 0 : index
    %8 = vector.load %arg1[%c1, %c0_7, %c0_8, %c0_9] : memref<4x17x17x128xbf16, #tpu.memory_space<vmem>>, vector<1x16x16x128xbf16>
    %9 = vector.shape_cast %8 : vector<1x16x16x128xbf16> to vector<16x16x128xbf16>
    %10 = vector.shape_cast %9 : vector<16x16x128xbf16> to vector<256x128xbf16>
    %c1_10 = arith.constant 1 : index
    %c0_11 = arith.constant 0 : index
    %c0_12 = arith.constant 0 : index
    %11 = vector.load %arg2[%c1_10, %c0_11, %c0_12] : memref<9x128x128xbf16, #tpu.memory_space<vmem>>, vector<1x128x128xbf16>
    %12 = vector.shape_cast %11 : vector<1x128x128xbf16> to vector<128x128xbf16>
    %cst_13 = arith.constant dense<0.000000e+00> : vector<256x128xf32>
    %13 = tpu.matmul %10, %12, %cst_13 {dimension_numbers = #tpu.dot_dimension_numbers<[1], [0], [0], [1], [0, 0, 1, 1], [], []>} : vector<256x128xbf16>, vector<128x128xbf16>, vector<256x128xf32> -> vector<256x128xf32>
    %14 = arith.addf %7, %13 : vector<256x128xf32>
    %c0_14 = arith.constant 0 : index
    %c0_15 = arith.constant 0 : index
    %c1_16 = arith.constant 1 : index
    %c0_17 = arith.constant 0 : index
    %15 = vector.load %arg1[%c0_14, %c0_15, %c1_16, %c0_17] : memref<4x17x17x128xbf16, #tpu.memory_space<vmem>>, vector<1x16x16x128xbf16>
    %16 = vector.shape_cast %15 : vector<1x16x16x128xbf16> to vector<16x16x128xbf16>
    %17 = vector.shape_cast %16 : vector<16x16x128xbf16> to vector<256x128xbf16>
    %c2 = arith.constant 2 : index
    %c0_18 = arith.constant 0 : index
    %c0_19 = arith.constant 0 : index
    %18 = vector.load %arg2[%c2, %c0_18, %c0_19] : memref<9x128x128xbf16, #tpu.memory_space<vmem>>, vector<1x128x128xbf16>
    %19 = vector.shape_cast %18 : vector<1x128x128xbf16> to vector<128x128xbf16>
    %cst_20 = arith.constant dense<0.000000e+00> : vector<256x128xf32>
    %20 = tpu.matmul %17, %19, %cst_20 {dimension_numbers = #tpu.dot_dimension_numbers<[1], [0], [0], [1], [0, 0, 1, 1], [], []>} : vector<256x128xbf16>, vector<128x128xbf16>, vector<256x128xf32> -> vector<256x128xf32>
    %21 = arith.addf %14, %20 : vector<256x128xf32>
    %c2_21 = arith.constant 2 : index
    %c0_22 = arith.constant 0 : index
    %c0_23 = arith.constant 0 : index
    %c0_24 = arith.constant 0 : index
    %22 = vector.load %arg1[%c2_21, %c0_22, %c0_23, %c0_24] : memref<4x17x17x128xbf16, #tpu.memory_space<vmem>>, vector<1x16x16x128xbf16>
    %23 = vector.shape_cast %22 : vector<1x16x16x128xbf16> to vector<16x16x128xbf16>
    %24 = vector.shape_cast %23 : vector<16x16x128xbf16> to vector<256x128xbf16>
    %c3 = arith.constant 3 : index
    %c0_25 = arith.constant 0 : index
    %c0_26 = arith.constant 0 : index
    %25 = vector.load %arg2[%c3, %c0_25, %c0_26] : memref<9x128x128xbf16, #tpu.memory_space<vmem>>, vector<1x128x128xbf16>
    %26 = vector.shape_cast %25 : vector<1x128x128xbf16> to vector<128x128xbf16>
    %cst_27 = arith.constant dense<0.000000e+00> : vector<256x128xf32>
    %27 = tpu.matmul %24, %26, %cst_27 {dimension_numbers = #tpu.dot_dimension_numbers<[1], [0], [0], [1], [0, 0, 1, 1], [], []>} : vector<256x128xbf16>, vector<128x128xbf16>, vector<256x128xf32> -> vector<256x128xf32>
    %28 = arith.addf %21, %27 : vector<256x128xf32>
    %c3_28 = arith.constant 3 : index
    %c0_29 = arith.constant 0 : index
    %c0_30 = arith.constant 0 : index
    %c0_31 = arith.constant 0 : index
    %29 = vector.load %arg1[%c3_28, %c0_29, %c0_30, %c0_31] : memref<4x17x17x128xbf16, #tpu.memory_space<vmem>>, vector<1x16x16x128xbf16>
    %30 = vector.shape_cast %29 : vector<1x16x16x128xbf16> to vector<16x16x128xbf16>
    %31 = vector.shape_cast %30 : vector<16x16x128xbf16> to vector<256x128xbf16>
    %c4 = arith.constant 4 : index
    %c0_32 = arith.constant 0 : index
    %c0_33 = arith.constant 0 : index
    %32 = vector.load %arg2[%c4, %c0_32, %c0_33] : memref<9x128x128xbf16, #tpu.memory_space<vmem>>, vector<1x128x128xbf16>
    %33 = vector.shape_cast %32 : vector<1x128x128xbf16> to vector<128x128xbf16>
    %cst_34 = arith.constant dense<0.000000e+00> : vector<256x128xf32>
    %34 = tpu.matmul %31, %33, %cst_34 {dimension_numbers = #tpu.dot_dimension_numbers<[1], [0], [0], [1], [0, 0, 1, 1], [], []>} : vector<256x128xbf16>, vector<128x128xbf16>, vector<256x128xf32> -> vector<256x128xf32>
    %35 = arith.addf %28, %34 : vector<256x128xf32>
    %c2_35 = arith.constant 2 : index
    %c0_36 = arith.constant 0 : index
    %c1_37 = arith.constant 1 : index
    %c0_38 = arith.constant 0 : index
    %36 = vector.load %arg1[%c2_35, %c0_36, %c1_37, %c0_38] : memref<4x17x17x128xbf16, #tpu.memory_space<vmem>>, vector<1x16x16x128xbf16>
    %37 = vector.shape_cast %36 : vector<1x16x16x128xbf16> to vector<16x16x128xbf16>
    %38 = vector.shape_cast %37 : vector<16x16x128xbf16> to vector<256x128xbf16>
    %c5 = arith.constant 5 : index
    %c0_39 = arith.constant 0 : index
    %c0_40 = arith.constant 0 : index
    %39 = vector.load %arg2[%c5, %c0_39, %c0_40] : memref<9x128x128xbf16, #tpu.memory_space<vmem>>, vector<1x128x128xbf16>
    %40 = vector.shape_cast %39 : vector<1x128x128xbf16> to vector<128x128xbf16>
    %cst_41 = arith.constant dense<0.000000e+00> : vector<256x128xf32>
    %41 = tpu.matmul %38, %40, %cst_41 {dimension_numbers = #tpu.dot_dimension_numbers<[1], [0], [0], [1], [0, 0, 1, 1], [], []>} : vector<256x128xbf16>, vector<128x128xbf16>, vector<256x128xf32> -> vector<256x128xf32>
    %42 = arith.addf %35, %41 : vector<256x128xf32>
    %c0_42 = arith.constant 0 : index
    %c1_43 = arith.constant 1 : index
    %c0_44 = arith.constant 0 : index
    %c0_45 = arith.constant 0 : index
    %43 = vector.load %arg1[%c0_42, %c1_43, %c0_44, %c0_45] : memref<4x17x17x128xbf16, #tpu.memory_space<vmem>>, vector<1x16x16x128xbf16>
    %44 = vector.shape_cast %43 : vector<1x16x16x128xbf16> to vector<16x16x128xbf16>
    %45 = vector.shape_cast %44 : vector<16x16x128xbf16> to vector<256x128xbf16>
    %c6 = arith.constant 6 : index
    %c0_46 = arith.constant 0 : index
    %c0_47 = arith.constant 0 : index
    %46 = vector.load %arg2[%c6, %c0_46, %c0_47] : memref<9x128x128xbf16, #tpu.memory_space<vmem>>, vector<1x128x128xbf16>
    %47 = vector.shape_cast %46 : vector<1x128x128xbf16> to vector<128x128xbf16>
    %cst_48 = arith.constant dense<0.000000e+00> : vector<256x128xf32>
    %48 = tpu.matmul %45, %47, %cst_48 {dimension_numbers = #tpu.dot_dimension_numbers<[1], [0], [0], [1], [0, 0, 1, 1], [], []>} : vector<256x128xbf16>, vector<128x128xbf16>, vector<256x128xf32> -> vector<256x128xf32>
    %49 = arith.addf %42, %48 : vector<256x128xf32>
    %c1_49 = arith.constant 1 : index
    %c1_50 = arith.constant 1 : index
    %c0_51 = arith.constant 0 : index
    %c0_52 = arith.constant 0 : index
    %50 = vector.load %arg1[%c1_49, %c1_50, %c0_51, %c0_52] : memref<4x17x17x128xbf16, #tpu.memory_space<vmem>>, vector<1x16x16x128xbf16>
    %51 = vector.shape_cast %50 : vector<1x16x16x128xbf16> to vector<16x16x128xbf16>
    %52 = vector.shape_cast %51 : vector<16x16x128xbf16> to vector<256x128xbf16>
    %c7 = arith.constant 7 : index
    %c0_53 = arith.constant 0 : index
    %c0_54 = arith.constant 0 : index
    %53 = vector.load %arg2[%c7, %c0_53, %c0_54] : memref<9x128x128xbf16, #tpu.memory_space<vmem>>, vector<1x128x128xbf16>
    %54 = vector.shape_cast %53 : vector<1x128x128xbf16> to vector<128x128xbf16>
    %cst_55 = arith.constant dense<0.000000e+00> : vector<256x128xf32>
    %55 = tpu.matmul %52, %54, %cst_55 {dimension_numbers = #tpu.dot_dimension_numbers<[1], [0], [0], [1], [0, 0, 1, 1], [], []>} : vector<256x128xbf16>, vector<128x128xbf16>, vector<256x128xf32> -> vector<256x128xf32>
    %56 = arith.addf %49, %55 : vector<256x128xf32>
    %c0_56 = arith.constant 0 : index
    %c1_57 = arith.constant 1 : index
    %c1_58 = arith.constant 1 : index
    %c0_59 = arith.constant 0 : index
    %57 = vector.load %arg1[%c0_56, %c1_57, %c1_58, %c0_59] : memref<4x17x17x128xbf16, #tpu.memory_space<vmem>>, vector<1x16x16x128xbf16>
    %58 = vector.shape_cast %57 : vector<1x16x16x128xbf16> to vector<16x16x128xbf16>
    %59 = vector.shape_cast %58 : vector<16x16x128xbf16> to vector<256x128xbf16>
    %c8 = arith.constant 8 : index
    %c0_60 = arith.constant 0 : index
    %c0_61 = arith.constant 0 : index
    %60 = vector.load %arg2[%c8, %c0_60, %c0_61] : memref<9x128x128xbf16, #tpu.memory_space<vmem>>, vector<1x128x128xbf16>
    %61 = vector.shape_cast %60 : vector<1x128x128xbf16> to vector<128x128xbf16>
    %cst_62 = arith.constant dense<0.000000e+00> : vector<256x128xf32>
    %62 = tpu.matmul %59, %61, %cst_62 {dimension_numbers = #tpu.dot_dimension_numbers<[1], [0], [0], [1], [0, 0, 1, 1], [], []>} : vector<256x128xbf16>, vector<128x128xbf16>, vector<256x128xf32> -> vector<256x128xf32>
    %63 = arith.addf %56, %62 : vector<256x128xf32>
    %c0_63 = arith.constant 0 : index
    %c0_64 = arith.constant 0 : index
    %64 = vector.load %arg3[%c0_63, %c0_64] : memref<1x128xf32, #tpu.memory_space<vmem>>, vector<1x128xf32>
    %65 = vector.broadcast %64 : vector<1x128xf32> to vector<256x128xf32>
    %66 = arith.addf %63, %65 : vector<256x128xf32>
    %cst_65 = arith.constant 0.000000e+00 : f32
    %67 = vector.broadcast %cst_65 : f32 to vector<256x128xf32>
    %68 = arith.cmpf oge, %66, %67 : vector<256x128xf32>
    %cst_66 = arith.constant 0.00999999977 : f32
    %69 = vector.broadcast %cst_66 : f32 to vector<256x128xf32>
    %70 = arith.mulf %69, %66 : vector<256x128xf32>
    %71 = arith.select %68, %66, %70 : vector<256x128xi1>, vector<256x128xf32>
    %c0_67 = arith.constant 0 : index
    %c0_68 = arith.constant 0 : index
    %c0_69 = arith.constant 0 : index
    %72 = vector.load %arg4[%c0_67, %c0_68, %c0_69] : memref<1x256x128xf32, #tpu.memory_space<vmem>>, vector<1x256x128xf32>
    %73 = vector.shape_cast %72 : vector<1x256x128xf32> to vector<256x128xf32>
    %74 = vector.shape_cast %71 : vector<256x128xf32> to vector<1x256x128xf32>
    tpu.vector_store %arg4[%c0_67, %c0_68, %c0_69], %74 {strides = array<i32>} : memref<1x256x128xf32, #tpu.memory_space<vmem>>, vector<1x256x128xf32>,
    return
  }
  func.func @transform_0(%arg0: i32) -> (i32, i32, i32, i32) {
    %c0_i32 = arith.constant 0 : i32
    %c0_i32_0 = arith.constant 0 : i32
    %c0_i32_1 = arith.constant 0 : i32
    %c0_i32_2 = arith.constant 0 : i32
    return %arg0, %c0_i32, %c0_i32_0, %c0_i32_1 : i32, i32, i32, i32
  }
  func.func @transform_1(%arg0: i32) -> (i32, i32, i32) {
    %c0_i32 = arith.constant 0 : i32
    %c0_i32_0 = arith.constant 0 : i32
    %c0_i32_1 = arith.constant 0 : i32
    %c0_i32_2 = arith.constant 0 : i32
    return %c0_i32, %c0_i32_0, %c0_i32_1 : i32, i32, i32
  }
  func.func @transform_2(%arg0: i32) -> (i32, i32) {
    %c0_i32 = arith.constant 0 : i32
    %c0_i32_0 = arith.constant 0 : i32
    %c0_i32_1 = arith.constant 0 : i32
    return %c0_i32, %c0_i32_0 : i32, i32
  }
  func.func @transform_3(%arg0: i32) -> (i32, i32, i32) {
    %c0_i32 = arith.constant 0 : i32
    %c0_i32_0 = arith.constant 0 : i32
    %c0_i32_1 = arith.constant 0 : i32
    return %arg0, %c0_i32, %c0_i32_0 : i32, i32, i32
  }
}

</mosaic_0001>

<bundles_post_ra>
// kernel: downsample_forward.1
= control target key start
LH: loop header
LB: loop body
LE: loop exit
PB: predicated region body
PF: predicated region fallthrough
CT: control target
= control target key end

     0   :  { %8 = vsyncpa [#allocation3], 0  ;;  %s7679_s0 = inlined_call_operand.vmem [shape: bf16[8,17,17,128], index: 0, kind: input, shape index: {}]   ;;  %s7680_s1 = inlined_call_operand.vmem [shape: bf16[9,128,128], index: 1, kind: input, shape index: {}]   ;;  %s7681_s2 = inlined_call_operand.vmem [shape: f32[1,128], index: 2, kind: input, shape index: {}]   ;;  %s7682_s3 = inlined_call_operand.hbm [shape: f32[2,256,128], index: 3, kind: output, shape index: {}]  }
   0x1   :  { %10 = vsyncpa [#allocation3 + $0x1], 0  ;;  %s6778_s12 = smov 0   ;;  %s6780_s13 = smov 0  }
   0x2   :  { %s6782_s14 = smov 0   ;;  %s6784_s15 = smov 0  }
   0x3 LB: > { %s6799_s16 = sadd.s32 4294967295, %s6753_s15   ;;  %s4939_s17 = sadd.s32 4294967294, %s6753_s15   ;;  %s6753_s15 = sphi %s6784_s15, %s7690_s15   ;;  %s6749_s14 = sphi %s6782_s14, %s7689_s14   ;;  %s6745_s13 = sphi %s6780_s13, %s7688_s13   ;;  %s6741_s12 = sphi %s6778_s12, %s7687_s12  }
   0x4   : > { %s6803_s18 = sadd.s32 1, %s6753_s15   ;;  %s91_s19 = sadd.s32 1, %s6749_s14 }
   0x5   : > { %s88_s20 = ssub.s32 %s6753_s15, %s6803_s18  ;;  %p101_p0 = scmp.ne.s32.totalorder %s6749_s14, %s6745_s13 }
   0x6   : > { %p89_p1 = scmp.eq.s32.totalorder %s88_s20, 0  ;;  %p102_p2 = scmp.eq.s32.totalorder %s6799_s16, 1 }
   0x7   : > { %p107_p3 = scmp.ne.s32.totalorder %s6745_s13, %s6741_s12  ;;  %p108_p4 = scmp.eq.s32.totalorder %s4939_s17, 1 }
   0x8   : > { %s6814_s21 = scalar_select %p89_p1, %s6749_s14, %s91_s19  }
   0x9   : > { %p6816_p5 = por %p102_p2, %p101_p0  ;;  %p6820_p6 = por %p108_p4, %p107_p3 }
   0xa   : > { %p4942_p7 = scmp.ge.s32.totalorder %s6753_s15, 1  ;;  %p142_p8 = scmp.lt.s32.totalorder %s6753_s15, 3 }
   0xc   : > { %p143_p9 = pnand %p4942_p7, %p142_p8 }
   0xd   : > { %v6515_v0 = vld [vmem:[%s7680_s1 + $0x40] sm:$0xff] (!%p143_p9)   ;;  %s4944_s26 = sshll.u32 (!%p143_p9), %s6799_s16, 2  ;;  %v6517_v2 = vld [vmem:[%s7680_s1 + $0x48] sm:$0xff] (!%p143_p9)   ;;  %v6519_v4 = vld [vmem:[%s7680_s1 + $0x50] sm:$0xff] (!%p143_p9)   ;;  %vm931_vm0 = vsmask.f32 (!%p143_p9), 3328 }
   0xe   : > { %146 = sbr.rel (%p143_p9) target bundleno = 565 (0x235), region = 32  ;;  %v6516_v1 = vld [vmem:[%s7680_s1 + $0x100] sm:$0xff] (!%p143_p9)   ;;  %p168_p10 = scmp.lt.s32.totalorder (!%p143_p9), %s4944_s26, 7  ;;  %5769 = vmatprep.subr.bf16.mxu1 (!%p143_p9), %v6515_v0  ;;  %v6518_v3 = vld [vmem:[%s7680_s1 + $0x108] sm:$0xff] (!%p143_p9)   ;;  %v6520_v5 = vld [vmem:[%s7680_s1 + $0x110] sm:$0xff] (!%p143_p9)  }
   0xf   : > { %5961 = vmatprep.subr.bf16.mxu0 (!%p143_p9), %v6516_v1  ;;  %5770 = vmatpush3.bf16.msra.mxu1 (!%p143_p9), %v6515_v0  ;;  %v6521_v6 = vld [vmem:[%s7680_s1 + $0x58] sm:$0xff] (!%p143_p9)   ;;  %v6523_v8 = vld [vmem:[%s7680_s1 + $0x60] sm:$0xff] (!%p143_p9)   ;;  %v6525_v10 = vld [vmem:[%s7680_s1 + $0x68] sm:$0xff] (!%p143_p9)   ;;  %vm932_vm1 = vsmask.f32 (!%p143_p9), 7440  ;;  %s5552_s17 = sshll.u32 (!%p143_p9), %s6799_s16, 12 }
  0x10   : > { %5962 = vmatpush3.bf16.msra.mxu0 (!%p143_p9), %v6516_v1  ;;  %5771 = vmatprep.subr.bf16.mxu1 (!%p143_p9), %v6517_v2  ;;  %v6522_v7 = vld [vmem:[%s7680_s1 + $0x118] sm:$0xff] (!%p143_p9)   ;;  %v6524_v9 = vld [vmem:[%s7680_s1 + $0x120] sm:$0xff] (!%p143_p9)   ;;  %v6526_v11 = vld [vmem:[%s7680_s1 + $0x128] sm:$0xff] (!%p143_p9)   ;;  %s7629_s16 = scalar_lea.hbm (!%p143_p9), %s7682_s3, %s5552_s17  ;;  %s6755_s28 = smov (!%p143_p9), [#allocation2]  }
  0x11   : > { %5963 = vmatprep.subr.bf16.mxu0 (!%p143_p9), %v6518_v3  ;;  %v6527_v14 = vld [vmem:[%s7680_s1 + $0x70] sm:$0xff] (!%p143_p9)   ;;  %v6529_v16 = vld [vmem:[%s7680_s1 + $0x78] sm:$0xff] (!%p143_p9)   ;;  %v6534_v19 = vld [vmem:[%s7680_s1] sm:$0xff] (!%p143_p9)   ;;  %s6695_s29 = sshll.u32 (!%p143_p9), %s6755_s28, 4  ;;  %s6696_s29 = int_to_ptr.vmem [resolvable:$false] %s6695_s29 }
  0x12   : > { %v6528_v15 = vld [vmem:[%s7680_s1 + $0x130] sm:$0xff] (!%p143_p9)   ;;  %v6530_v17 = vld [vmem:[%s7680_s1 + $0x138] sm:$0xff] (!%p143_p9)   ;;  %v6536_v20 = vld [vmem:[%s7680_s1 + $0x140] sm:$0xff] (!%p143_p9)   ;;  %s6697_s30 = scalar_lea.vmem (!%p143_p9), %s6696_s29, 8192 }
  0x13   : > { %5772 = vmatpush3.bf16.msra.mxu1 (!%p143_p9), %v6517_v2  ;;  %v6537_v22 = vld [vmem:[%s7680_s1 + $0x148] sm:$0xff] (!%p143_p9)   ;;  %v6548_v27 = vld [vmem:[%s7680_s1 + $0x10] sm:$0xff] (!%p143_p9)   ;;  %v6544_v32 = vld [vmem:[%s7680_s1 + $0x158] sm:$0xff] (!%p143_p9)  }
  0x14   : > { %5964 = vmatpush3.bf16.msra.mxu0 (!%p143_p9), %v6518_v3  ;;  %5773 = vmatprep.subr.bf16.mxu1 (!%p143_p9), %v6519_v4  ;;  %v6541_v25 = vld [vmem:[%s7680_s1 + $0x8] sm:$0xff] (!%p143_p9)   ;;  %v6543_v28 = vld [vmem:[%s7680_s1 + $0x150] sm:$0xff] (!%p143_p9)   ;;  %v6555_v33 = vld [vmem:[%s7680_s1 + $0x18] sm:$0xff] (!%p143_p9)  }
  0x15   : > { %s7692_s26 = smov (!%p168_p10, %s4944_s26), 7  ;;  %5965 = vmatprep.subr.bf16.mxu0 %v6520_v5  ;;  %v6550_v35 = vld [vmem:[%s7680_s1 + $0x160] sm:$0xff]   ;;  %v6551_v43 = vld [vmem:[%s7680_s1 + $0x168] sm:$0xff]   ;;  %vm6935_vm2 = vmor %vm931_vm0, %vm932_vm1 }
  0x16   : > { %s6473_s20 = smul.u32 204, %s7692_s26  ;;  %v6561_v53 = vld [vmem:[%s7680_s1 + $0x20] sm:$0xff]   ;;  %v6557_v0 = vld [vmem:[%s7680_s1 + $0x170] sm:$0xff]  }
  0x17   : > { %5774 = vmatpush3.bf16.msra.mxu1 %v6519_v4 }
  0x18   : > { %5966 = vmatpush3.bf16.msra.mxu0 %v6520_v5  ;;  %5775 = vmatprep.subr.bf16.mxu1 %v6521_v6  ;;  %s6860_s4 = scalar_lea.vmem %s7679_s0, %s6473_s20 }
  0x19   : > { %5967 = vmatprep.subr.bf16.mxu0 %v6522_v7  ;;  %v6531_v12 = vld [vmem:[%s6860_s4 + $0xcc] sm:$0xff]   ;;  %v6532_v13 = vld [vmem:[%s6860_s4 + $0x264] sm:$0xff]   ;;  %v6533_v18 = vld [vmem:[%s6860_s4 + $0xd8] sm:$0xff]  }
  0x1a   : > { %5785 = vmatprep.mubr.bf16.mxu1 %v6531_v12  ;;  %5977 = vmatprep.mubr.bf16.mxu0 %v6532_v13  ;;  %v6535_v21 = vld [vmem:[%s6860_s4 + $0x270] sm:$0xff]   ;;  %v6538_v23 = vld [vmem:[%s6860_s4 + $0xe4] sm:$0xff]   ;;  %v6539_v24 = vld [vmem:[%s6860_s4 + $0x27c] sm:$0xff]  }
  0x1b   : > { %5776 = vmatpush3.bf16.msra.mxu1 %v6521_v6  ;;  %v6540_v26 = vld [vmem:[%s6860_s4 + $0xf0] sm:$0xff]   ;;  %v6542_v29 = vld [vmem:[%s6860_s4 + $0x288] sm:$0xff]   ;;  %v6545_v30 = vld [vmem:[%s6860_s4 + $0xfc] sm:$0xff]  }
  0x1c   : > { %5968 = vmatpush3.bf16.msra.mxu0 %v6522_v7  ;;  %5777 = vmatprep.subr.bf16.mxu1 %v6523_v8  ;;  %v6546_v31 = vld [vmem:[%s6860_s4 + $0x294] sm:$0xff]   ;;  %v6547_v34 = vld [vmem:[%s6860_s4 + $0x108] sm:$0xff]   ;;  %v6549_v36 = vld [vmem:[%s6860_s4 + $0x2a0] sm:$0xff]  }
  0x1d   : > { %5969 = vmatprep.subr.bf16.mxu0 %v6524_v9  ;;  %v6552_v37 = vld [vmem:[%s6860_s4 + $0x114] sm:$0xff]   ;;  %v5227_v39 = vld [vmem:[%s6860_s4 + $0x19c] sm:$0xf]  ;;  %v5228_v40 = vld [vmem:[%s6860_s4 + $0x1a0] sm:$0x1] }
  0x1e   : > { %v5226_v38 = vld [vmem:[%s6860_s4 + $0x198] sm:$0xf]  ;;  %v6553_v44 = vld [vmem:[%s6860_s4 + $0x2ac] sm:$0xff]   ;;  %v2472_v45 = vshll.u32 %v5227_v39, 16  ;;  %v2476_v46 = vshrl.u32 %v5227_v39, 16  ;;  %v2482_v47 = vshll.u32 %v5228_v40, 16 }
  0x1f   : > { %5778 = vmatpush3.bf16.msra.mxu1 %v6523_v8  ;;  %v2463_v41 = vshrl.u32 %v5226_v38, 16  ;;  %v2466_v42 = vshll.u32 %v5226_v38, 16  ;;  %v5229_v55 = vld [vmem:[%s6860_s4 + $0x1a4] sm:$0xf]  ;;  %v5230_v56 = vld [vmem:[%s6860_s4 + $0x1a8] sm:$0xf] }
  0x20   : > { %5970 = vmatpush3.bf16.msra.mxu0 %v6524_v9  ;;  %5779 = vmatprep.subr.bf16.mxu1 %v6525_v10  ;;  %v2474_v50 = vrot.slane %v2472_v45, 5  ;;  %v2478_v51 = vrot.slane %v2476_v46, 4  ;;  %v2484_v52 = vrot.slane %v2482_v47, 5  ;;  %v5231_v57 = vld [vmem:[%s6860_s4 + $0x1ac] sm:$0x1]  ;;  %v2487_v60 = vshrl.u32 %v5229_v55, 16 }
  0x21   : > { %5971 = vmatprep.subr.bf16.mxu0 %v6526_v11  ;;  %v2465_v48 = vrot.slane %v2463_v41, 4  ;;  %v2468_v49 = vrot.slane %v2466_v42, 5  ;;  %v2490_v61 = vshll.u32 %v5229_v55, 16  ;;  %v2496_v62 = vshll.u32 %v5230_v56, 16  ;;  %v6554_v63 = vld [vmem:[%s6860_s4 + $0x120] sm:$0xff]   ;;  %v6556_v4 = vld [vmem:[%s6860_s4 + $0x2b8] sm:$0xff]  }
  0x22   : > { %v2479_v59 = vor.u32 %v2478_v51, %v2474_v50  ;;  %v2500_v2 = vshrl.u32 %v5230_v56, 16  ;;  %v2506_v3 = vshll.u32 %v5231_v57, 16  ;;  %v6559_v5 = vld [vmem:[%s6860_s4 + $0x12c] sm:$0xff]   ;;  %v2489_v7 = vrot.slane %v2487_v60, 4  ;;  %v6560_v38 = vld [vmem:[%s6860_s4 + $0x138] sm:$0xff]   ;;  %v6563_v45 = vld [vmem:[%s6860_s4 + $0x144] sm:$0xff]  }
  0x23   : > { %5780 = vmatpush3.bf16.msra.mxu1 %v6525_v10  ;;  %v2469_v54 = vor.u32 %v2468_v49, %v2465_v48  ;;  %v2492_v8 = vrot.slane %v2490_v61, 5  ;;  %v2498_v9 = vrot.slane %v2496_v62, 5  ;;  %v5232_v13 = vld [vmem:[%s6860_s4 + $0x1b0] sm:$0xf]  ;;  %v5236_v41 = vld [vmem:[%s6860_s4 + $0x1c0] sm:$0xf] }
  0x24   : > { %5972 = vmatpush3.bf16.msra.mxu0 %v6526_v11  ;;  %5781 = vmatprep.subr.bf16.mxu1 %v6527_v14  ;;  %v2480_v6 = vrot.slane %v2479_v59, 4  ;;  %v2502_v11 = vrot.slane %v2500_v2, 4  ;;  %v2508_v12 = vrot.slane %v2506_v3, 5  ;;  %v5237_v42 = vld [vmem:[%s6860_s4 + $0x1c4] sm:$0x1]  ;;  %v2544_v47 = vshll.u32 %v5236_v41, 16 }
  0x25   : > { %5973 = vmatprep.subr.bf16.mxu0 %v6528_v15  ;;  %v2470_v1 = vrot.slane %v2469_v54, 4  ;;  %v2548_v48 = vshrl.u32 %v5236_v41, 16  ;;  %v6566_v57 = vld [vmem:[%s7680_s1 + $0x188] sm:$0xff]   ;;  %v5240_v3 = vld [vmem:[%s6860_s4 + $0x1d0] sm:$0x1]  ;;  %v6573_v41 = vld [vmem:[%s7680_s1 + $0x38] sm:$0xff]  }
  0x26   : > { %v2546_v55 = vrot.slane %v2544_v47, 5  ;;  %v5238_v62 = vld [vmem:[%s6860_s4 + $0x1c8] sm:$0xf] }
  0x27   : > { %5782 = vmatpush3.bf16.msra.mxu1 %v6527_v14  ;;  %v2475_v10 = vsel %vm6935_vm2, %v2470_v1, %v2474_v50  ;;  %v2485_v14 = vsel %vm6935_vm2, %v2480_v6, %v2484_v52  ;;  %v2554_v52 = vshll.u32 %v5237_v42, 16  ;;  %v2550_v56 = vrot.slane %v2548_v48, 4 }
  0x28   : > { %5974 = vmatpush3.bf16.msra.mxu0 %v6528_v15  ;;  %5783 = vmatprep.subr.bf16.mxu1 %v6529_v16  ;;  %v2493_v15 = vor.u32 %v2492_v8, %v2489_v7 }
  0x29   : > { %5975 = vmatprep.subr.bf16.mxu0 %v6530_v17  ;;  %v2556_v61 = vrot.slane %v2554_v52, 5  ;;  %v2551_v2 = vor.u32 %v2550_v56, %v2546_v55  ;;  %v6568_v52 = vld [vmem:[%s6860_s4 + $0x168] sm:$0xff]  }
  0x2b   : > { %5784 = vmatpush3.bf16.msra.mxu1 %v6529_v16  ;;  %v5233_v16 = vld [vmem:[%s6860_s4 + $0x1b4] sm:$0xf] }
  0x2c   : > { %5976 = vmatpush3.bf16.msra.mxu0 %v6530_v17  ;;  %5817 = vmatprep.subr.bf16.mxu1 %v6534_v19  ;;  %v5234_v17 = vld [vmem:[%s6860_s4 + $0x1b8] sm:$0x1] }
  0x2d   : > { %6009 = vmatprep.subr.bf16.mxu0 %v6536_v20 }
  0x2e   : > { %5786 = vmatmul.mubr.bf16.vlgmr.msra.gmra.mrb[0].mxu1 %v6533_v18  ;;  %v2511_v18 = vshrl.u32 %v5232_v13, 16 }
  0x2f   : > { %5978 = vmatmul.mubr.bf16.vlgmr.msra.gmra.mrb[0].mxu0 %v6535_v21  ;;  %5818 = vmatpush3.bf16.msra.mxu1 %v6534_v19  ;;  %v2514_v19 = vshll.u32 %v5232_v13, 16  ;;  %v2503_v21 = vor.u32 %v2502_v11, %v2498_v9  ;;  %v6564_v13 = vld [vmem:[%s6860_s4 + $0x150] sm:$0xff]  }
  0x30   : > { %6010 = vmatpush3.bf16.msra.mxu0 %v6536_v20  ;;  %5789 = vmatprep.mubr.bf16.mxu1 %v6538_v23  ;;  %v5290_v20 = vcombine.low %v2475_v10, %v2485_v14  ;;  %v2524_v23 = vshrl.u32 %v5233_v16, 16  ;;  %v2552_v10 = vrot.slane %v2551_v2, 4  ;;  %v5247_v2 = vld [vmem:[%s6860_s4 + $0x1ec] sm:$0xf] }
  0x31   : > { %6011 = vmatprep.subr.bf16.mxu0 %v6537_v22  ;;  %5981 = vmatprep.mubr.bf16.mxu0 %v6539_v24  ;;  %v6558_v24 = vld [vmem:[%s7680_s1 + $0x178] sm:$0xff]  }
  0x32   : > { %5819 = vmatprep.subr.bf16.mxu1 %v6541_v25 }
  0x33   : > { %5820 = vmatpush3.bf16.msra.mxu1 %v6541_v25  ;;  %v2494_v25 = vrot.slane %v2493_v15, 4 }
  0x34   : > { %6012 = vmatpush3.bf16.msra.mxu0 %v6537_v22  ;;  %5821 = vmatprep.subr.bf16.mxu1 %v6548_v27  ;;  %v2520_v22 = vshll.u32 %v5233_v16, 16 }
  0x35   : > { %6013 = vmatprep.subr.bf16.mxu0 %v6543_v28 }
  0x36   : > { %5790 = vmatmul.mubr.bf16.gmra.mrb[4].mxu1 %v6540_v26  ;;  %v2513_v26 = vrot.slane %v2511_v18, 4  ;;  %v6570_v18 = vld [vmem:[%s7680_s1 + $0x190] sm:$0xff]  }
  0x37   : > { %5982 = vmatmul.mubr.bf16.gmra.mrb[4].mxu0 %v6542_v29  ;;  %5793 = vmatprep.mubr.bf16.mxu1 %v6545_v30  ;;  %v6565_v29 = vld [vmem:[%s7680_s1 + $0x28] sm:$0xff]   ;;  %v2504_v30 = vrot.slane %v2503_v21, 4 }
  0x38   : > { %6014 = vmatpush3.bf16.msra.mxu0 %v6543_v28  ;;  %5985 = vmatprep.mubr.bf16.mxu0 %v6546_v31  ;;  %v2530_v28 = vshll.u32 %v5234_v17, 16  ;;  %v2522_v31 = vrot.slane %v2520_v22, 5  ;;  %v5241_v22 = vld [vmem:[%s6860_s4 + $0x1d4] sm:$0xf] }
  0x39   : > { %6015 = vmatprep.subr.bf16.mxu0 %v6544_v32  ;;  %5822 = vmatpush3.bf16.msra.mxu1 %v6548_v27  ;;  %v2516_v27 = vrot.slane %v2514_v19, 5  ;;  %v2509_v39 = vsel %vm6935_vm2, %v2504_v30, %v2508_v12  ;;  %v2557_v19 = vsel %vm6935_vm2, %v2552_v10, %v2556_v61  ;;  %v6574_v61 = vld [vmem:[%s7680_s1 + $0x198] sm:$0xff]  }
  0x3a   : > { %5823 = vmatprep.subr.bf16.mxu1 %v6555_v33 }
  0x3c   : > { %6016 = vmatpush3.bf16.msra.mxu0 %v6544_v32  ;;  %v2526_v32 = vrot.slane %v2524_v23, 4  ;;  %v5242_v23 = vld [vmem:[%s6860_s4 + $0x1d8] sm:$0xf] }
  0x3d   : > { %6017 = vmatprep.subr.bf16.mxu0 %v6550_v35  ;;  %5824 = vmatpush3.bf16.msra.mxu1 %v6555_v33  ;;  %v2499_v33 = vsel %vm6935_vm2, %v2494_v25, %v2498_v9  ;;  %v2578_v9 = vshll.u32 %v5240_v3, 16  ;;  %v2592_v30 = vshll.u32 %v5242_v23, 16  ;;  %v5248_v3 = vld [vmem:[%s6860_s4 + $0x1f0] sm:$0xf] }
  0x3e   : > { %5794 = vmatmul.mubr.bf16.gmra.mrb[8].mxu1 %v6547_v34  ;;  %5825 = vmatprep.subr.bf16.mxu1 %v6561_v53  ;;  %v6562_v34 = vld [vmem:[%s7680_s1 + $0x180] sm:$0xff]   ;;  %v2527_v40 = vor.u32 %v2526_v32, %v2522_v31 }
  0x3f   : > { %5986 = vmatmul.mubr.bf16.gmra.mrb[8].mxu0 %v6549_v36  ;;  %5797 = vmatprep.mubr.bf16.mxu1 %v6552_v37  ;;  %v2532_v36 = vrot.slane %v2530_v28, 5  ;;  %v5235_v37 = vld [vmem:[%s6860_s4 + $0x1bc] sm:$0xf]  ;;  %v2580_v17 = vrot.slane %v2578_v9, 5  ;;  %v2586_v28 = vshll.u32 %v5241_v22, 16 }
  0x40   : > { %6018 = vmatpush3.bf16.msra.mxu0 %v6550_v35  ;;  %5989 = vmatprep.mubr.bf16.mxu0 %v6553_v44  ;;  %v2517_v35 = vor.u32 %v2516_v27, %v2513_v26  ;;  %v2538_v44 = vshll.u32 %v5235_v37, 16  ;;  %v2528_v49 = vrot.slane %v2527_v40, 4  ;;  %v2583_v27 = vshrl.u32 %v5241_v22, 16  ;;  %v5244_v40 = vld [vmem:[%s6860_s4 + $0x1e0] sm:$0xf] }
  0x41   : > { %6019 = vmatprep.subr.bf16.mxu0 %v6551_v43  ;;  %5826 = vmatpush3.bf16.msra.mxu1 %v6561_v53  ;;  %v5291_v53 = vcombine.low %v2499_v33, %v2509_v39  ;;  %v2610_v47 = vshll.u32 %v5244_v40, 16 }
  0x42   : > { %v2518_v46 = vrot.slane %v2517_v35, 4  ;;  %5827 = vmatprep.subr.bf16.mxu1 %v6565_v29  ;;  %v2540_v51 = vrot.slane %v2538_v44, 5  ;;  %v2533_v59 = vsel %vm6935_vm2, %v2528_v49, %v2532_v36  ;;  %v2588_v35 = vrot.slane %v2586_v28, 5  ;;  %v5245_v44 = vld [vmem:[%s6860_s4 + $0x1e4] sm:$0xf] }
  0x43   : > { %v6572_v28 = vld [vmem:[%s6860_s4 + $0x180] sm:$0xff]  }
  0x44   : > { %6020 = vmatpush3.bf16.msra.mxu0 %v6551_v43  ;;  %v2535_v43 = vshrl.u32 %v5235_v37, 16  ;;  %v2523_v54 = vsel %vm6935_vm2, %v2518_v46, %v2522_v31  ;;  %v2596_v31 = vshrl.u32 %v5242_v23, 16  ;;  %v2594_v37 = vrot.slane %v2592_v30, 5 }
  0x45   : > { %6021 = vmatprep.subr.bf16.mxu0 %v6557_v0  ;;  %5828 = vmatpush3.bf16.msra.mxu1 %v6565_v29  ;;  %v5292_v1 = vcombine.low %v2523_v54, %v2533_v59  ;;  %v2607_v46 = vshrl.u32 %v5244_v40, 16  ;;  %v7029_v40 = vld [vmem:[%s7680_s1 + $0x80] sm:$0xff]  }
  0x46   : > { %5798 = vmatmul.mubr.bf16.gmra.mrb[12].mxu1 %v6554_v63  ;;  %v2537_v50 = vrot.slane %v2535_v43, 4  ;;  %v5239_v63 = vld [vmem:[%s6860_s4 + $0x1cc] sm:$0xf] }
  0x47   : > { %5990 = vmatmul.mubr.bf16.gmra.mrb[12].mxu0 %v6556_v4  ;;  %5801 = vmatprep.mubr.bf16.mxu1 %v6559_v5  ;;  %v2559_v4 = vshrl.u32 %v5238_v62, 16  ;;  %v2562_v5 = vshll.u32 %v5238_v62, 16  ;;  %v2568_v7 = vshll.u32 %v5239_v63, 16  ;;  %v2572_v8 = vshrl.u32 %v5239_v63, 16  ;;  %v6571_v63 = vld [vmem:[%s6860_s4 + $0x174] sm:$0xff]  }
  0x48   : > { %6022 = vmatpush3.bf16.msra.mxu0 %v6557_v0  ;;  %6025 = vmatprep.mubr.bf16.mxu0 %v5290_v20  ;;  %v2541_v60 = vor.u32 %v2540_v51, %v2537_v50  ;;  %v6569_v0 = vld [vmem:[%s7680_s1 + $0x30] sm:$0xff]   ;;  %v6567_v20 = vld [vmem:[%s6860_s4 + $0x15c] sm:$0xff]   ;;  %v2616_v50 = vshll.u32 %v5245_v44, 16  ;;  %v2620_v51 = vshrl.u32 %v5245_v44, 16  ;;  %v2609_v54 = vrot.slane %v2607_v46, 4 }
  0x49   : > { %6023 = vmatprep.subr.bf16.mxu0 %v6558_v24  ;;  %5829 = vmatprep.subr.bf16.mxu1 %v6569_v0  ;;  %v2561_v11 = vrot.slane %v2559_v4, 4  ;;  %v2564_v12 = vrot.slane %v2562_v5, 5  ;;  %v2570_v15 = vrot.slane %v2568_v7, 5  ;;  %v2574_v16 = vrot.slane %v2572_v8, 4  ;;  %v5253_v44 = vld [vmem:[%s6860_s4 + $0x204] sm:$0xf] }
  0x4a   : > { %v2542_v6 = vrot.slane %v2541_v60, 4  ;;  %5830 = vmatpush3.bf16.msra.mxu1 %v6569_v0  ;;  %v2618_v59 = vrot.slane %v2616_v50, 5  ;;  %v2622_v60 = vrot.slane %v2620_v51, 4  ;;  %v2631_v7 = vshrl.u32 %v5247_v2, 16 }
  0x4b   : > { %v2565_v21 = vor.u32 %v2564_v12, %v2561_v11  ;;  %v2575_v26 = vor.u32 %v2574_v16, %v2570_v15  ;;  %5831 = vmatprep.subr.bf16.mxu1 %v6573_v41  ;;  %v2634_v8 = vshll.u32 %v5247_v2, 16  ;;  %v2640_v11 = vshll.u32 %v5248_v3, 16 }
  0x4c   : > { %6024 = vmatpush3.bf16.msra.mxu0 %v6558_v24  ;;  %v2547_v14 = vsel %vm6935_vm2, %v2542_v6, %v2546_v55  ;;  %v5243_v24 = vld [vmem:[%s6860_s4 + $0x1dc] sm:$0x1]  ;;  %v2612_v55 = vrot.slane %v2610_v47, 5  ;;  %v2623_v5 = vor.u32 %v2622_v60, %v2618_v59  ;;  %v5249_v6 = vld [vmem:[%s6860_s4 + $0x1f4] sm:$0x1]  ;;  %v2644_v12 = vshrl.u32 %v5248_v3, 16 }
  0x4d   : > { %6057 = vmatprep.subr.bf16.mxu0 %v6562_v34  ;;  %v5293_v25 = vcombine.low %v2547_v14, %v2557_v19  ;;  %v2566_v29 = vrot.slane %v2565_v21, 4  ;;  %v2602_v32 = vshll.u32 %v5243_v24, 16  ;;  %v2576_v33 = vrot.slane %v2575_v26, 4  ;;  %v5251_v24 = vld [vmem:[%s6860_s4 + $0x1fc] sm:$0xf] }
  0x4e   : > { %5802 = vmatmul.mubr.bf16.gmra.mrb[16].mxu1 %v6560_v38  ;;  %v2598_v38 = vrot.slane %v2596_v31, 4  ;;  %v2613_v0 = vor.u32 %v2612_v55, %v2609_v54  ;;  %v2633_v14 = vrot.slane %v2631_v7, 4  ;;  %v2650_v16 = vshll.u32 %v5249_v6, 16  ;;  %v6578_v55 = vld [vmem:[%s7680_s1 + $0x1a0] sm:$0xff]  }
  0x4f   : > { %6026 = vmatmul.mubr.bf16.vlgmr.msra.gmra.mrb[0].mxu0 %v5291_v53  ;;  %5805 = vmatprep.mubr.bf16.mxu1 %v6563_v45  ;;  %v2571_v36 = vsel %vm6935_vm2, %v2566_v29, %v2570_v15  ;;  %v2604_v39 = vrot.slane %v2602_v32, 5  ;;  %v2581_v42 = vsel %vm6935_vm2, %v2576_v33, %v2580_v17  ;;  %v5246_v45 = vld [vmem:[%s6860_s4 + $0x1e8] sm:$0x1]  ;;  %v2636_v15 = vrot.slane %v2634_v8, 5  ;;  %v6575_v33 = vld [vmem:[%s6860_s4] sm:$0xff]   ;;  %v6579_v8 = vld [vmem:[%s6860_s4 + $0x18] sm:$0xff]  }
  0x50   : > { %6058 = vmatpush3.bf16.msra.mxu0 %v6562_v34  ;;  %6029 = vmatprep.mubr.bf16.mxu0 %v5292_v1  ;;  %v2585_v34 = vrot.slane %v2583_v27, 4  ;;  %v5294_v48 = vcombine.low %v2571_v36, %v2581_v42  ;;  %v2599_v49 = vor.u32 %v2598_v38, %v2594_v37  ;;  %v2626_v56 = vshll.u32 %v5246_v45, 16  ;;  %v5254_v45 = vld [vmem:[%s6860_s4 + $0x208] sm:$0xf] }
  0x51   : > { %6059 = vmatprep.subr.bf16.mxu0 %v6566_v57  ;;  %5832 = vmatpush3.bf16.msra.mxu1 %v6573_v41  ;;  %v2614_v10 = vrot.slane %v2613_v0, 4  ;;  %v2646_v19 = vrot.slane %v2644_v12, 4  ;;  %v2637_v22 = vor.u32 %v2636_v15, %v2633_v14  ;;  %v2652_v23 = vrot.slane %v2650_v16, 5  ;;  %v6581_v16 = vld [vmem:[%s7680_s1 + $0x88] sm:$0xff]  }
  0x52   : > { %v2589_v43 = vor.u32 %v2588_v35, %v2585_v34  ;;  %v2628_v1 = vrot.slane %v2626_v56, 5  ;;  %v2664_v31 = vshll.u32 %v5251_v24, 16  ;;  %v2668_v35 = vshrl.u32 %v5251_v24, 16  ;;  %5865 = vmatprep.subr.bf16.mxu1 %v7029_v40 }
  0x53   : > { %v2619_v17 = vsel %vm6935_vm2, %v2614_v10, %v2618_v59  ;;  %v2638_v32 = vrot.slane %v2637_v22, 4  ;;  %v2682_v50 = vshll.u32 %v5253_v44, 16  ;;  %v2692_v54 = vshrl.u32 %v5254_v45, 16 }
  0x54   : > { %6060 = vmatpush3.bf16.msra.mxu0 %v6566_v57  ;;  %v2590_v53 = vrot.slane %v2589_v43, 4  ;;  %v2600_v57 = vrot.slane %v2599_v49, 4  ;;  %v2670_v42 = vrot.slane %v2668_v35, 4  ;;  %v2679_v49 = vshrl.u32 %v5253_v44, 16 }
  0x55   : > { %6061 = vmatprep.subr.bf16.mxu0 %v6570_v18  ;;  %v2684_v59 = vrot.slane %v2682_v50, 5 }
  0x56   : > { %5806 = vmatmul.mubr.bf16.gmra.mrb[20].mxu1 %v6564_v13  ;;  %v2595_v62 = vsel %vm6935_vm2, %v2590_v53, %v2594_v37  ;;  %v2605_v4 = vsel %vm6935_vm2, %v2600_v57, %v2604_v39  ;;  %v2624_v13 = vrot.slane %v2623_v5, 4  ;;  %v2666_v39 = vrot.slane %v2664_v31, 5  ;;  %v5257_v5 = vld [vmem:[%s6860_s4 + $0x214] sm:$0xf] }
  0x57   : > { %6030 = vmatmul.mubr.bf16.gmra.mrb[4].mxu0 %v5293_v25  ;;  %5809 = vmatprep.mubr.bf16.mxu1 %v6567_v20  ;;  %v5295_v9 = vcombine.low %v2595_v62, %v2605_v4  ;;  %v5250_v20 = vld [vmem:[%s6860_s4 + $0x1f8] sm:$0xf]  ;;  %v5252_v25 = vld [vmem:[%s6860_s4 + $0x200] sm:$0x1]  ;;  %v2688_v53 = vshll.u32 %v5254_v45, 16  ;;  %v2681_v57 = vrot.slane %v2679_v49, 4 }
  0x58   : > { %6062 = vmatpush3.bf16.msra.mxu0 %v6570_v18  ;;  %6033 = vmatprep.mubr.bf16.mxu0 %v5294_v48  ;;  %v2642_v18 = vrot.slane %v2640_v11, 5  ;;  %v2629_v21 = vsel %vm6935_vm2, %v2624_v13, %v2628_v1  ;;  %v2655_v26 = vshrl.u32 %v5250_v20, 16  ;;  %v2658_v30 = vshll.u32 %v5250_v20, 16  ;;  %v5255_v48 = vld [vmem:[%s6860_s4 + $0x20c] sm:$0x1] }
  0x59   : > { %6063 = vmatprep.subr.bf16.mxu0 %v6574_v61  ;;  %v5296_v27 = vcombine.low %v2619_v17, %v2629_v21  ;;  %v2674_v36 = vshll.u32 %v5252_v25, 16  ;;  %v2698_v60 = vshll.u32 %v5255_v48, 16  ;;  %v2690_v62 = vrot.slane %v2688_v53, 5  ;;  %v6576_v1 = vld [vmem:[%s6860_s4 + $0xc] sm:$0xff]   ;;  %v5259_v25 = vld [vmem:[%s6860_s4 + $0x21c] sm:$0xf] }
  0x5a   : > { %v2647_v29 = vor.u32 %v2646_v19, %v2642_v18  ;;  %v2657_v34 = vrot.slane %v2655_v26, 4  ;;  %v2660_v38 = vrot.slane %v2658_v30, 5  ;;  %v2643_v41 = vsel %vm6935_vm2, %v2638_v32, %v2642_v18  ;;  %v5256_v4 = vld [vmem:[%s6860_s4 + $0x210] sm:$0xf]  ;;  %v6582_v17 = vld [vmem:[%s7680_s1 + $0x1a8] sm:$0xff]  }
  0x5b   : > { %v2676_v43 = vrot.slane %v2674_v36, 5  ;;  %v2685_v2 = vor.u32 %v2684_v59, %v2681_v57  ;;  %v2700_v3 = vrot.slane %v2698_v60, 5  ;;  %v2703_v10 = vshrl.u32 %v5256_v4, 16  ;;  %v5261_v30 = vld [vmem:[%s6860_s4 + $0x224] sm:$0x1]  ;;  %v6585_v60 = vld [vmem:[%s7680_s1 + $0x90] sm:$0xff]  }
  0x5c   : > { %6064 = vmatpush3.bf16.msra.mxu0 %v6574_v61  ;;  %v2648_v37 = vrot.slane %v2647_v29, 4  ;;  %v2661_v47 = vor.u32 %v2660_v38, %v2657_v34  ;;  %v2706_v11 = vshll.u32 %v5256_v4, 16  ;;  %v2712_v14 = vshll.u32 %v5257_v5, 16  ;;  %v5260_v29 = vld [vmem:[%s6860_s4 + $0x220] sm:$0xf]  ;;  %v6586_v4 = vld [vmem:[%s7680_s1 + $0x1b0] sm:$0xff]  }
  0x5d   : > { %6065 = vmatprep.subr.bf16.mxu0 %v6578_v55  ;;  %v2686_v13 = vrot.slane %v2685_v2, 4  ;;  %v2716_v15 = vshrl.u32 %v5257_v5, 16  ;;  %v2705_v19 = vrot.slane %v2703_v10, 4  ;;  %v2727_v31 = vshrl.u32 %v5259_v25, 16  ;;  %v5263_v48 = vld [vmem:[%s6860_s4 + $0x22c] sm:$0xf] }
  0x5e   : > { %5810 = vmatmul.mubr.bf16.gmra.mrb[24].mxu1 %v6568_v52  ;;  %v2653_v46 = vsel %vm6935_vm2, %v2648_v37, %v2652_v23  ;;  %v2671_v52 = vor.u32 %v2670_v42, %v2666_v39  ;;  %v2662_v56 = vrot.slane %v2661_v47, 4  ;;  %v2708_v20 = vrot.slane %v2706_v11, 5  ;;  %v6580_v42 = vld [vmem:[%s6860_s4 + $0x24] sm:$0xff]  }
  0x5f   : > { %6034 = vmatmul.mubr.bf16.gmra.mrb[8].mxu0 %v5295_v9  ;;  %5813 = vmatprep.mubr.bf16.mxu1 %v6571_v63  ;;  %v5297_v51 = vcombine.low %v2643_v41, %v2653_v46  ;;  %v2694_v63 = vrot.slane %v2692_v54, 4  ;;  %v5258_v9 = vld [vmem:[%s6860_s4 + $0x218] sm:$0x1]  ;;  %v2691_v22 = vsel %vm6935_vm2, %v2686_v13, %v2690_v62  ;;  %v2714_v23 = vrot.slane %v2712_v14, 5 }
  0x60   : > { %6037 = vmatprep.mubr.bf16.mxu0 %v5296_v27  ;;  %v2672_v61 = vrot.slane %v2671_v52, 4  ;;  %v2667_v0 = vsel %vm6935_vm2, %v2662_v56, %v2666_v39  ;;  %6066 = vmatpush3.bf16.msra.mxu0 %v6578_v55  ;;  %v2722_v21 = vshll.u32 %v5258_v9, 16  ;;  %v2718_v24 = vrot.slane %v2716_v15, 4  ;;  %v6583_v56 = vld [vmem:[%s6860_s4 + $0x30] sm:$0xff]   ;;  %v5266_v9 = vld [vmem:[%s6860_s4 + $0x238] sm:$0xf] }
  0x61   : > { %v2695_v7 = vor.u32 %v2694_v63, %v2690_v62  ;;  %6067 = vmatprep.subr.bf16.mxu0 %v6582_v17  ;;  %v2709_v27 = vor.u32 %v2708_v20, %v2705_v19  ;;  %v2730_v34 = vshll.u32 %v5259_v25, 16  ;;  %v2736_v35 = vshll.u32 %v5260_v29, 16 }
  0x62   : > { %v2677_v6 = vsel %vm6935_vm2, %v2672_v61, %v2676_v43  ;;  %v2729_v37 = vrot.slane %v2727_v31, 4  ;;  %v2740_v38 = vshrl.u32 %v5260_v29, 16  ;;  %v2746_v39 = vshll.u32 %v5261_v30, 16 }
  0x63   : > { %v5298_v12 = vcombine.low %v2667_v0, %v2677_v6  ;;  %v2696_v18 = vrot.slane %v2695_v7, 4  ;;  %v2710_v36 = vrot.slane %v2709_v27, 4  ;;  %v2732_v43 = vrot.slane %v2730_v34, 5 }
  0x64   : > { %6068 = vmatpush3.bf16.msra.mxu0 %v6582_v17  ;;  %v2738_v44 = vrot.slane %v2736_v35, 5  ;;  %v2742_v46 = vrot.slane %v2740_v38, 4  ;;  %v2748_v47 = vrot.slane %v2746_v39, 5  ;;  %v2760_v57 = vshll.u32 %v5263_v48, 16  ;;  %v6584_v17 = vld [vmem:[%s6860_s4 + $0x3c] sm:$0xff]  }
  0x65   : > { %v2701_v26 = vsel %vm6935_vm2, %v2696_v18, %v2700_v3  ;;  %v2715_v45 = vsel %vm6935_vm2, %v2710_v36, %v2714_v23  ;;  %v2733_v50 = vor.u32 %v2732_v43, %v2729_v37  ;;  %v2764_v59 = vshrl.u32 %v5263_v48, 16  ;;  %6069 = vmatprep.subr.bf16.mxu0 %v6586_v4 }
  0x66   : > { %5814 = vmatmul.mubr.bf16.gmra.mrb[28].mxu1 %v6572_v28  ;;  %v2724_v28 = vrot.slane %v2722_v21, 5  ;;  %v5299_v32 = vcombine.low %v2691_v22, %v2701_v26  ;;  %v2743_v55 = vor.u32 %v2742_v46, %v2738_v44  ;;  %v2762_v2 = vrot.slane %v2760_v57, 5 }
  0x67   : > { %6038 = vmatmul.mubr.bf16.gmra.mrb[12].mxu0 %v5297_v51  ;;  %5833 = vmatprep.mubr.bf16.mxu1 %v6575_v33  ;;  %v2719_v33 = vor.u32 %v2718_v24, %v2714_v23  ;;  %v5264_v51 = vld [vmem:[%s6860_s4 + $0x230] sm:$0x1]  ;;  %v2734_v61 = vrot.slane %v2733_v50, 4  ;;  %v2766_v3 = vrot.slane %v2764_v59, 4  ;;  %v2784_v18 = vshll.u32 %v5266_v9, 16  ;;  %v6587_v24 = vld [vmem:[%s6860_s4 + $0x48] sm:$0xff]  }
  0x68   : > { %6041 = vmatprep.mubr.bf16.mxu0 %v5298_v12  ;;  %v2770_v0 = vshll.u32 %v5264_v51, 16  ;;  %v5267_v12 = vld [vmem:[%s6860_s4 + $0x23c] sm:$0x1]  ;;  %v2788_v19 = vshrl.u32 %v5266_v9, 16  ;;  %6070 = vmatpush3.bf16.msra.mxu0 %v6586_v4  ;;  %v5271_v50 = vld [vmem:[%s6860_s4 + $0x24c] sm:$0xf] }
  0x69   : > { %v2720_v41 = vrot.slane %v2719_v33, 4  ;;  %v2739_v5 = vsel %vm6935_vm2, %v2734_v61, %v2738_v44  ;;  %v2767_v11 = vor.u32 %v2766_v3, %v2762_v2  ;;  %v2794_v23 = vshll.u32 %v5267_v12, 16  ;;  %v5270_v33 = vld [vmem:[%s6860_s4 + $0x248] sm:$0x1]  ;;  %v5272_v51 = vld [vmem:[%s6860_s4 + $0x250] sm:$0xf] }
  0x6a   : > { %v2772_v7 = vrot.slane %v2770_v0, 5  ;;  %v2786_v26 = vrot.slane %v2784_v18, 5  ;;  %v2790_v27 = vrot.slane %v2788_v19, 4  ;;  %v2818_v43 = vshll.u32 %v5270_v33, 16  ;;  %v6596_v18 = vld [vmem:[%s7680_s1 + $0x1c0] sm:$0xff]  }
  0x6b   : > { %v2725_v49 = vsel %vm6935_vm2, %v2720_v41, %v2724_v28  ;;  %v2768_v20 = vrot.slane %v2767_v11, 4  ;;  %v5268_v28 = vld [vmem:[%s6860_s4 + $0x240] sm:$0xf]  ;;  %v2796_v31 = vrot.slane %v2794_v23, 5  ;;  %v2832_v61 = vshll.u32 %v5272_v51, 16  ;;  %v6597_v23 = vld [vmem:[%s6860_s4 + $0x78] sm:$0xff]  }
  0x6c   : > { %v5300_v54 = vcombine.low %v2715_v45, %v2725_v49  ;;  %v2799_v34 = vshrl.u32 %v5268_v28, 16  ;;  %v2791_v36 = vor.u32 %v2790_v27, %v2786_v26  ;;  %v2802_v37 = vshll.u32 %v5268_v28, 16  ;;  %v6599_v27 = vld [vmem:[%s6860_s4 + $0x84] sm:$0xff]   ;;  %v6604_v33 = vld [vmem:[%s6860_s4 + $0x3c] sm:$0xff]  }
  0x6d   : > { %v2773_v29 = vsel %vm6935_vm2, %v2768_v20, %v2772_v7  ;;  %v2820_v49 = vrot.slane %v2818_v43, 5  ;;  %v6591_v7 = vld [vmem:[%s6860_s4 + $0x60] sm:$0xff]   ;;  %v6592_v20 = vld [vmem:[%s6860_s4 + $0xc] sm:$0xff]  }
  0x6e   : > { %5834 = vmatmul.mubr.bf16.vlgmr.msra.gmra.mrb[0].mxu1 %v6576_v1  ;;  %v2744_v1 = vrot.slane %v2743_v55, 4  ;;  %v2801_v41 = vrot.slane %v2799_v34, 4  ;;  %v2792_v44 = vrot.slane %v2791_v36, 4  ;;  %v2804_v45 = vrot.slane %v2802_v37, 5  ;;  %v6602_v28 = vld [vmem:[%s7680_s1 + $0x1c8] sm:$0xff]   ;;  %v6605_v34 = vld [vmem:[%s6860_s4 + $0x9c] sm:$0xff]  }
  0x6f   : > { %5866 = vmatpush3.bf16.msra.mxu1 %v7029_v40  ;;  %5837 = vmatprep.mubr.bf16.mxu1 %v6579_v8  ;;  %v5262_v40 = vld [vmem:[%s6860_s4 + $0x228] sm:$0xf]  ;;  %v5265_v8 = vld [vmem:[%s6860_s4 + $0x234] sm:$0xf]  ;;  %v2823_v55 = vshrl.u32 %v5271_v50, 16  ;;  %v6614_v37 = vld [vmem:[%s7680_s1 + $0x1d8] sm:$0xff]  }
  0x70   : > { %6042 = vmatmul.mubr.bf16.gmra.mrb[16].mxu0 %v5299_v32  ;;  %5867 = vmatprep.subr.bf16.mxu1 %v6581_v16  ;;  %v2751_v52 = vshrl.u32 %v5262_v40, 16  ;;  %v2754_v53 = vshll.u32 %v5262_v40, 16  ;;  %v2749_v10 = vsel %vm6935_vm2, %v2744_v1, %v2748_v47  ;;  %v2775_v13 = vshrl.u32 %v5265_v8, 16  ;;  %v5269_v32 = vld [vmem:[%s6860_s4 + $0x244] sm:$0xf]  ;;  %v6589_v47 = vld [vmem:[%s7680_s1 + $0x98] sm:$0xff]  }
  0x71   : > { %6045 = vmatprep.mubr.bf16.mxu0 %v5300_v54  ;;  %v2778_v14 = vshll.u32 %v5265_v8, 16  ;;  %v5301_v15 = vcombine.low %v2739_v5, %v2749_v10  ;;  %v2808_v38 = vshll.u32 %v5269_v32, 16  ;;  %v5273_v54 = vld [vmem:[%s6860_s4 + $0x254] sm:$0x1]  ;;  %v2825_v1 = vrot.slane %v2823_v55, 4  ;;  %v6609_v36 = vld [vmem:[%s6860_s4 + $0xa8] sm:$0xff]  }
  0x72   : > { %v2753_v62 = vrot.slane %v2751_v52, 4  ;;  %v2756_v63 = vrot.slane %v2754_v53, 5  ;;  %v2777_v21 = vrot.slane %v2775_v13, 4  ;;  %v2797_v52 = vsel %vm6935_vm2, %v2792_v44, %v2796_v31  ;;  %v6601_v31 = vld [vmem:[%s6860_s4 + $0x30] sm:$0xff]  }
  0x73   : > { %5868 = vmatpush3.bf16.msra.mxu1 %v6581_v16  ;;  %v2780_v22 = vrot.slane %v2778_v14, 5  ;;  %v2810_v46 = vrot.slane %v2808_v38, 5  ;;  %v2805_v53 = vor.u32 %v2804_v45, %v2801_v41  ;;  %v2842_v3 = vshll.u32 %v5273_v54, 16  ;;  %v883_v38 = vld [vmem:[%s6860_s4] sm:$0xf]  ;;  %v6610_v55 = vld [vmem:[%s6860_s4 + $0x54] sm:$0xff]  }
  0x74   : > { %5869 = vmatprep.subr.bf16.mxu1 %v6585_v60  ;;  %v2757_v6 = vor.u32 %v2756_v63, %v2753_v62  ;;  %v2836_v62 = vshrl.u32 %v5272_v51, 16  ;;  %v6590_v63 = vld [vmem:[%s7680_s1 + $0x1b8] sm:$0xff]   ;;  %v2834_v5 = vrot.slane %v2832_v61, 5  ;;  %v885_v41 = vld [vmem:[%s6860_s4 + $0x8] sm:$0x1]  ;;  %v938_v43 = vshll.u32 %v883_v38, 16 }
  0x75   : > { %v2781_v30 = vor.u32 %v2780_v22, %v2777_v21  ;;  %v2806_v0 = vrot.slane %v2805_v53, 4  ;;  %6071 = vmatprep.subr.bf16.mxu0 %v6590_v63  ;;  %v2844_v10 = vrot.slane %v2842_v3, 5  ;;  %v6593_v22 = vld [vmem:[%s6860_s4 + $0x6c] sm:$0xff]  }
  0x76   : > { %5838 = vmatmul.mubr.bf16.gmra.mrb[4].mxu1 %v6580_v42  ;;  %v2758_v16 = vrot.slane %v2757_v6, 4  ;;  %v2812_v42 = vshrl.u32 %v5269_v32, 16  ;;  %v2838_v6 = vrot.slane %v2836_v62, 4  ;;  %6072 = vmatpush3.bf16.msra.mxu0 %v6590_v63  ;;  %v6608_v32 = vld [vmem:[%s7680_s1 + $0x1d0] sm:$0xff]   ;;  %v7165_v62 = vld [vmem:[%s7680_s1 + $0xc0] sm:$0xff]  }
  0x77   : > { %5841 = vmatprep.mubr.bf16.mxu1 %v6583_v56  ;;  %5870 = vmatpush3.bf16.msra.mxu1 %v6585_v60  ;;  %v2782_v39 = vrot.slane %v2781_v30, 4  ;;  %v2826_v56 = vshll.u32 %v5271_v50, 16  ;;  %v6588_v60 = vld [vmem:[%s6860_s4 + $0x54] sm:$0xff]   ;;  %v2811_v8 = vsel %vm6935_vm2, %v2806_v0, %v2810_v46  ;;  %v887_v53 = vld [vmem:[%s6860_s4 + $0x10] sm:$0xf] }
  0x78   : > { %6046 = vmatmul.mubr.bf16.gmra.mrb[20].mxu0 %v5301_v15  ;;  %v2763_v25 = vsel %vm6935_vm2, %v2758_v16, %v2762_v2  ;;  %v2814_v48 = vrot.slane %v2812_v42, 4  ;;  %5871 = vmatprep.subr.bf16.mxu1 %v6589_v47  ;;  %v2839_v12 = vor.u32 %v2838_v6, %v2834_v5  ;;  %v6594_v15 = vld [vmem:[%s7680_s1 + $0xa0] sm:$0xff]   ;;  %v6603_v30 = vld [vmem:[%s6860_s4 + $0x90] sm:$0xff]   ;;  %v935_v42 = vshrl.u32 %v883_v38, 16 }
  0x79   : > { %v5302_v35 = vcombine.low %v2763_v25, %v2773_v29  ;;  %v2787_v40 = vsel %vm6935_vm2, %v2782_v39, %v2786_v26  ;;  %v2828_v2 = vrot.slane %v2826_v56, 5  ;;  %6105 = vmatprep.subr.bf16.mxu0 %v6596_v18  ;;  %v6595_v25 = vld [vmem:[%s6860_s4 + $0x18] sm:$0xff]   ;;  %v6598_v26 = vld [vmem:[%s6860_s4 + $0x24] sm:$0xff]   ;;  %v6606_v29 = vld [vmem:[%s7680_s1 + $0xb0] sm:$0xff]   ;;  %v972_v61 = vshrl.u32 %v887_v53, 16 }
  0x7a   : > { %v5303_v57 = vcombine.low %v2787_v40, %v2797_v52  ;;  %v2815_v59 = vor.u32 %v2814_v48, %v2810_v46  ;;  %v2840_v16 = vrot.slane %v2839_v12, 4  ;;  %v884_v39 = vld [vmem:[%s6860_s4 + $0x4] sm:$0xf]  ;;  %v954_v46 = vshll.u32 %v885_v41, 16  ;;  %v886_v48 = vld [vmem:[%s6860_s4 + $0xc] sm:$0xf] }
  0x7b   : > { %6049 = vmatprep.mubr.bf16.mxu0 %v5302_v35  ;;  %5872 = vmatpush3.bf16.msra.mxu1 %v6589_v47  ;;  %v2829_v9 = vor.u32 %v2828_v2, %v2825_v1  ;;  %v6612_v35 = vld [vmem:[%s7680_s1 + $0xb8] sm:$0xff]   ;;  %v944_v44 = vshll.u32 %v884_v39, 16  ;;  %v948_v45 = vshrl.u32 %v884_v39, 16  ;;  %v937_v47 = vrot.slane %v935_v42, 4 }
  0x7c   : > { %v2816_v4 = vrot.slane %v2815_v59, 4  ;;  %5873 = vmatprep.subr.bf16.mxu1 %v6594_v15  ;;  %v2845_v19 = vsel %vm6935_vm2, %v2840_v16, %v2844_v10  ;;  %v940_v40 = vrot.slane %v938_v43, 5  ;;  %v956_v52 = vrot.slane %v954_v46, 5  ;;  %v6611_v6 = vld [vmem:[%s6860_s4 + $0xb4] sm:$0xff]   ;;  %v891_v16 = vld [vmem:[%s6860_s4 + $0x20] sm:$0x1] }
  0x7d   : > { %v2830_v14 = vrot.slane %v2829_v9, 4  ;;  %v946_v50 = vrot.slane %v944_v44, 5  ;;  %v950_v51 = vrot.slane %v948_v45, 4  ;;  %v959_v54 = vshrl.u32 %v886_v48, 16  ;;  %v6618_v9 = vld [vmem:[%s7680_s1 + $0x1e0] sm:$0xff]  }
  0x7e   : > { %5842 = vmatmul.mubr.bf16.gmra.mrb[8].mxu1 %v6584_v17  ;;  %v2821_v11 = vsel %vm6935_vm2, %v2816_v4, %v2820_v49  ;;  %v6607_v49 = vld [vmem:[%s6860_s4 + $0x48] sm:$0xff]   ;;  %v941_v56 = vor.u32 %v940_v40, %v937_v47  ;;  %v962_v59 = vshll.u32 %v886_v48, 16 }
  0x7f   : > { %5845 = vmatprep.mubr.bf16.mxu1 %v6587_v24  ;;  %v5304_v13 = vcombine.low %v2811_v8, %v2821_v11  ;;  %v2835_v17 = vsel %vm6935_vm2, %v2830_v14, %v2834_v5  ;;  %5874 = vmatpush3.bf16.msra.mxu1 %v6594_v15  ;;  %v6600_v24 = vld [vmem:[%s7680_s1 + $0xa8] sm:$0xff]   ;;  %v951_v63 = vor.u32 %v950_v51, %v946_v50  ;;  %v961_v0 = vrot.slane %v959_v54, 4  ;;  %v890_v15 = vld [vmem:[%s6860_s4 + $0x1c] sm:$0xf] }
  0x80   : > { %6050 = vmatmul.mubr.bf16.gmra.mrb[24].mxu0 %v5303_v57  ;;  %v5305_v21 = vcombine.low %v2835_v17, %v2845_v19  ;;  %5875 = vmatprep.subr.bf16.mxu1 %v6600_v24  ;;  %v888_v57 = vld [vmem:[%s6860_s4 + $0x14] sm:$0x1]  ;;  %v942_v2 = vrot.slane %v941_v56, 4  ;;  %v964_v3 = vrot.slane %v962_v59, 5  ;;  %v974_v5 = vrot.slane %v972_v61, 4  ;;  %v6622_v51 = vld [vmem:[%s7680_s1 + $0x1e8] sm:$0xff]  }
  0x81   : > { %6053 = vmatprep.mubr.bf16.mxu0 %v5304_v13  ;;  %v978_v1 = vshll.u32 %v888_v57, 16  ;;  %v889_v13 = vld [vmem:[%s6860_s4 + $0x18] sm:$0xf]  ;;  %v895_v57 = vld [vmem:[%s6860_s4 + $0x30] sm:$0xf] }
  0x82   : > { %v947_v10 = vsel %vm6935_vm2, %v942_v2, %v946_v50  ;;  %v965_v11 = vor.u32 %v964_v3, %v961_v0  ;;  %v983_v17 = vshrl.u32 %v889_v13, 16  ;;  %v6620_v50 = vld [vmem:[%s7680_s1 + $0xc8] sm:$0xff]   ;;  %v896_v59 = vld [vmem:[%s6860_s4 + $0x34] sm:$0xf]  ;;  %v6617_v61 = vld [vmem:[%s6860_s4 + $0x78] sm:$0xff]   ;;  %v1031_v0 = vshrl.u32 %v895_v57, 16 }
  0x83   : > { %5876 = vmatpush3.bf16.msra.mxu1 %v6600_v24  ;;  %v980_v8 = vrot.slane %v978_v1, 5  ;;  %v1034_v1 = vshll.u32 %v895_v57, 16  ;;  %v1040_v2 = vshll.u32 %v896_v59, 16 }
  0x84   : > { %5877 = vmatprep.subr.bf16.mxu1 %v6606_v29  ;;  %v985_v24 = vrot.slane %v983_v17, 4  ;;  %v900_v17 = vld [vmem:[%s6860_s4 + $0x44] sm:$0x1] }
  0x86   : > { %5846 = vmatmul.mubr.bf16.gmra.mrb[12].mxu1 %v6588_v60  ;;  %v968_v60 = vshll.u32 %v887_v53, 16 }
  0x87   : > { %5849 = vmatprep.mubr.bf16.mxu1 %v6591_v7  ;;  %5878 = vmatpush3.bf16.msra.mxu1 %v6606_v29  ;;  %v952_v7 = vrot.slane %v951_v63, 4 }
  0x88   : > { %6054 = vmatmul.mubr.bf16.gmra.mrb[28].mxu0 %v5305_v21  ;;  %5879 = vmatprep.subr.bf16.mxu1 %v6612_v35  ;;  %v970_v4 = vrot.slane %v968_v60, 5  ;;  %v897_v60 = vld [vmem:[%s6860_s4 + $0x38] sm:$0x1] }
  0x89   : > { %6073 = vmatprep.mubr.bf16.mxu0 %v6592_v20  ;;  %v957_v14 = vsel %vm6935_vm2, %v952_v7, %v956_v52  ;;  %v966_v20 = vrot.slane %v965_v11, 4  ;;  %v1044_v7 = vshrl.u32 %v896_v59, 16  ;;  %v1042_v11 = vrot.slane %v1040_v2, 5  ;;  %v904_v59 = vld [vmem:[%s6860_s4 + $0x54] sm:$0xf] }
  0x8a   : > { %v975_v12 = vor.u32 %v974_v5, %v970_v4  ;;  %v5058_v19 = vcombine.low %v947_v10, %v957_v14  ;;  %v1036_v10 = vrot.slane %v1034_v1, 5  ;;  %v906_v1 = vld [vmem:[%s6860_s4 + $0x5c] sm:$0x1]  ;;  %v1103_v2 = vshrl.u32 %v904_v59, 16 }
  0x8b   : > { %5880 = vmatpush3.bf16.msra.mxu1 %v6612_v35  ;;  %v971_v29 = vsel %vm6935_vm2, %v966_v20, %v970_v4  ;;  %v6619_v4 = vld [vmem:[%s6860_s4 + $0x84] sm:$0xff]  }
  0x8c   : > { %5913 = vmatprep.subr.bf16.mxu1 %v7165_v62  ;;  %v976_v21 = vrot.slane %v975_v12, 4  ;;  %v1050_v12 = vshll.u32 %v897_v60, 16  ;;  %v905_v60 = vld [vmem:[%s6860_s4 + $0x58] sm:$0xf] }
  0x8e   : > { %5850 = vmatmul.mubr.bf16.gmra.mrb[16].mxu1 %v6593_v22  ;;  %v992_v22 = vshll.u32 %v890_v15, 16 }
  0x8f   : > { %5853 = vmatprep.mubr.bf16.mxu1 %v6597_v23  ;;  %v6613_v23 = vld [vmem:[%s6860_s4 + $0x60] sm:$0xff]  }
  0x90   : > { %6074 = vmatmul.mubr.bf16.vlgmr.msra.gmra.mrb[0].mxu0 %v6595_v25 }
  0x91   : > { %6106 = vmatpush3.bf16.msra.mxu0 %v6596_v18  ;;  %6077 = vmatprep.mubr.bf16.mxu0 %v6598_v26  ;;  %v986_v18 = vshll.u32 %v889_v13, 16  ;;  %v996_v26 = vshrl.u32 %v890_v15, 16  ;;  %v898_v13 = vld [vmem:[%s6860_s4 + $0x3c] sm:$0xf]  ;;  %v1046_v15 = vrot.slane %v1044_v7, 4 }
  0x92   : > { %6107 = vmatprep.subr.bf16.mxu0 %v6602_v28 }
  0x93   : > { %v988_v25 = vrot.slane %v986_v18, 5  ;;  %v998_v35 = vrot.slane %v996_v26, 4  ;;  %v1055_v18 = vshrl.u32 %v898_v13, 16 }
  0x95   : > { %6108 = vmatpush3.bf16.msra.mxu0 %v6602_v28  ;;  %v6615_v28 = vld [vmem:[%s6860_s4 + $0x6c] sm:$0xff]  }
  0x96   : > { %5854 = vmatmul.mubr.bf16.gmra.mrb[20].mxu1 %v6599_v27  ;;  %6109 = vmatprep.subr.bf16.mxu0 %v6608_v32  ;;  %v1002_v27 = vshll.u32 %v891_v16, 16  ;;  %v899_v16 = vld [vmem:[%s6860_s4 + $0x40] sm:$0xf] }
  0x97   : > { %5857 = vmatprep.mubr.bf16.mxu1 %v6603_v30  ;;  %v981_v30 = vsel %vm6935_vm2, %v976_v21, %v980_v8  ;;  %v6624_v8 = vld [vmem:[%s7680_s1 + $0xd0] sm:$0xff]   ;;  %v1052_v21 = vrot.slane %v1050_v12, 5  ;;  %v1068_v26 = vshrl.u32 %v899_v16, 16 }
  0x98   : > { %6078 = vmatmul.mubr.bf16.gmra.mrb[4].mxu0 %v6601_v31  ;;  %v994_v31 = vrot.slane %v992_v22, 5  ;;  %v5059_v43 = vcombine.low %v971_v29, %v981_v30  ;;  %v1058_v22 = vshll.u32 %v898_v13, 16  ;;  %v1074_v29 = vshll.u32 %v900_v17, 16  ;;  %v6626_v30 = vld [vmem:[%s7680_s1 + $0x1f0] sm:$0xff]  }
  0x99   : > { %6081 = vmatprep.mubr.bf16.mxu0 %v6604_v33  ;;  %6110 = vmatpush3.bf16.msra.mxu0 %v6608_v32  ;;  %v892_v32 = vld [vmem:[%s6860_s4 + $0x24] sm:$0xf]  ;;  %v893_v33 = vld [vmem:[%s6860_s4 + $0x28] sm:$0xf] }
  0x9a   : > { %6111 = vmatprep.subr.bf16.mxu0 %v6614_v37  ;;  %v1007_v38 = vshrl.u32 %v892_v32, 16  ;;  %v1010_v39 = vshll.u32 %v892_v32, 16  ;;  %v1016_v41 = vshll.u32 %v893_v33, 16  ;;  %v1020_v42 = vshrl.u32 %v893_v33, 16 }
  0x9b   : > { %v999_v45 = vor.u32 %v998_v35, %v994_v31  ;;  %v1070_v33 = vrot.slane %v1068_v26, 4 }
  0x9c   : > { %v1009_v47 = vrot.slane %v1007_v38, 4  ;;  %v1012_v40 = vrot.slane %v1010_v39, 5  ;;  %v1018_v48 = vrot.slane %v1016_v41, 5  ;;  %v901_v38 = vld [vmem:[%s6860_s4 + $0x48] sm:$0xf]  ;;  %v6628_v39 = vld [vmem:[%s7680_s1 + $0xd8] sm:$0xff]  }
  0x9d   : > { %6112 = vmatpush3.bf16.msra.mxu0 %v6614_v37  ;;  %v894_v37 = vld [vmem:[%s6860_s4 + $0x2c] sm:$0x1]  ;;  %v1000_v53 = vrot.slane %v999_v45, 4  ;;  %v1079_v45 = vshrl.u32 %v901_v38, 16 }
  0x9e   : > { %5858 = vmatmul.mubr.bf16.gmra.mrb[24].mxu1 %v6605_v34  ;;  %6113 = vmatprep.subr.bf16.mxu0 %v6618_v9  ;;  %v989_v34 = vor.u32 %v988_v25, %v985_v24  ;;  %v1026_v46 = vshll.u32 %v894_v37, 16  ;;  %v1057_v24 = vrot.slane %v1055_v18, 4  ;;  %v1064_v25 = vshll.u32 %v899_v16, 16  ;;  %v6627_v16 = vld [vmem:[%s6860_s4 + $0xb4] sm:$0xff]  }
  0x9f   : > { %5861 = vmatprep.mubr.bf16.mxu1 %v6609_v36  ;;  %v1004_v36 = vrot.slane %v1002_v27, 5  ;;  %v1076_v37 = vrot.slane %v1074_v29, 5 }
  0xa0   : > { %6082 = vmatmul.mubr.bf16.gmra.mrb[8].mxu0 %v6607_v49  ;;  %v990_v44 = vrot.slane %v989_v34, 4  ;;  %v1022_v49 = vrot.slane %v1020_v42, 4  ;;  %v1028_v54 = vrot.slane %v1026_v46, 5  ;;  %v1066_v32 = vrot.slane %v1064_v25, 5  ;;  %v6621_v34 = vld [vmem:[%s6860_s4 + $0x90] sm:$0xff]  }
  0xa1   : > { %6085 = vmatprep.mubr.bf16.mxu0 %v6610_v55  ;;  %6114 = vmatpush3.bf16.msra.mxu0 %v6618_v9  ;;  %v1013_v55 = vor.u32 %v1012_v40, %v1009_v47  ;;  %v1005_v63 = vsel %vm6935_vm2, %v1000_v53, %v1004_v36  ;;  %v1033_v9 = vrot.slane %v1031_v0, 4  ;;  %v1082_v46 = vshll.u32 %v901_v38, 16  ;;  %v6623_v40 = vld [vmem:[%s6860_s4 + $0x9c] sm:$0xff]   ;;  %v910_v38 = vld [vmem:[%s6860_s4 + $0x6c] sm:$0xf] }
  0xa2   : > { %v995_v52 = vsel %vm6935_vm2, %v990_v44, %v994_v31  ;;  %v1023_v56 = vor.u32 %v1022_v49, %v1018_v48  ;;  %6115 = vmatprep.subr.bf16.mxu0 %v6622_v51  ;;  %v1071_v42 = vor.u32 %v1070_v33, %v1066_v32  ;;  %v903_v44 = vld [vmem:[%s6860_s4 + $0x50] sm:$0x1] }
  0xa3   : > { %v5060_v3 = vcombine.low %v995_v52, %v1005_v63  ;;  %v1014_v5 = vrot.slane %v1013_v55, 4  ;;  %v1037_v20 = vor.u32 %v1036_v10, %v1033_v9  ;;  %v1081_v52 = vrot.slane %v1079_v45, 4 }
  0xa4   : > { %v1084_v53 = vrot.slane %v1082_v46, 5  ;;  %v1116_v9 = vshrl.u32 %v905_v60, 16  ;;  %v1122_v10 = vshll.u32 %v906_v1, 16  ;;  %v1151_v45 = vshrl.u32 %v910_v38, 16 }
  0xa5   : > { %6116 = vmatpush3.bf16.msra.mxu0 %v6622_v51  ;;  %v1038_v27 = vrot.slane %v1037_v20, 4  ;;  %v1072_v51 = vrot.slane %v1071_v42, 4 }
  0xa6   : > { %5862 = vmatmul.mubr.bf16.gmra.mrb[28].mxu1 %v6611_v6  ;;  %v1024_v6 = vrot.slane %v1023_v56, 4  ;;  %6117 = vmatprep.subr.bf16.mxu0 %v6626_v30  ;;  %v1085_v63 = vor.u32 %v1084_v53, %v1081_v52  ;;  %v1118_v17 = vrot.slane %v1116_v9, 4  ;;  %v1124_v18 = vrot.slane %v1122_v10, 5 }
  0xa7   : > { %5881 = vmatprep.mubr.bf16.mxu1 %v5058_v19  ;;  %v1043_v35 = vsel %vm6935_vm2, %v1038_v27, %v1042_v11  ;;  %v1153_v52 = vrot.slane %v1151_v45, 4 }
  0xa8   : > { %6086 = vmatmul.mubr.bf16.gmra.mrb[12].mxu0 %v6613_v23  ;;  %v1029_v14 = vsel %vm6935_vm2, %v1024_v6, %v1028_v54  ;;  %v1047_v23 = vor.u32 %v1046_v15, %v1042_v11  ;;  %v1098_v54 = vshll.u32 %v903_v44, 16  ;;  %v1112_v6 = vshll.u32 %v905_v60, 16  ;;  %v6625_v11 = vld [vmem:[%s6860_s4 + $0xa8] sm:$0xff]   ;;  %v912_v44 = vld [vmem:[%s6860_s4 + $0x74] sm:$0x1] }
  0xa9   : > { %6089 = vmatprep.mubr.bf16.mxu0 %v6615_v28  ;;  %v1060_v28 = vrot.slane %v1058_v22, 5  ;;  %6118 = vmatpush3.bf16.msra.mxu0 %v6626_v30  ;;  %v1086_v7 = vrot.slane %v1085_v63, 4  ;;  %v908_v22 = vld [vmem:[%s6860_s4 + $0x64] sm:$0xf] }
  0xaa   : > { %v1048_v31 = vrot.slane %v1047_v23, 4  ;;  %v1100_v0 = vrot.slane %v1098_v54, 5  ;;  %v909_v23 = vld [vmem:[%s6860_s4 + $0x68] sm:$0x1]  ;;  %v1140_v29 = vshrl.u32 %v908_v22, 16  ;;  %v7262_v54 = vld [vmem:[%s7680_s1 + $0x200] sm:$0xff]  }
  0xab   : > { %v1061_v36 = vor.u32 %v1060_v28, %v1057_v24  ;;  %v1136_v28 = vshll.u32 %v908_v22, 16  ;;  %v1146_v33 = vshll.u32 %v909_v23, 16  ;;  %v917_v22 = vld [vmem:[%s6860_s4 + $0x88] sm:$0xf] }
  0xac   : > { %v1053_v41 = vsel %vm6935_vm2, %v1048_v31, %v1052_v21 }
  0xad   : > { %v5062_v47 = vcombine.low %v1043_v35, %v1053_v41  ;;  %v1148_v42 = vrot.slane %v1146_v33, 5  ;;  %v1212_v33 = vshrl.u32 %v917_v22, 16 }
  0xae   : > { %5882 = vmatmul.mubr.bf16.vlgmr.msra.gmra.mrb[0].mxu1 %v5059_v43  ;;  %v902_v43 = vld [vmem:[%s6860_s4 + $0x4c] sm:$0xf] }
  0xaf   : > { %5914 = vmatpush3.bf16.msra.mxu1 %v7165_v62  ;;  %5885 = vmatprep.mubr.bf16.mxu1 %v5060_v3  ;;  %v1019_v62 = vsel %vm6935_vm2, %v1014_v5, %v1018_v48  ;;  %v1062_v48 = vrot.slane %v1061_v36, 4  ;;  %v1088_v49 = vshll.u32 %v902_v43, 16  ;;  %v1106_v5 = vshll.u32 %v904_v59, 16 }
  0xb0   : > { %5915 = vmatprep.subr.bf16.mxu1 %v6620_v50  ;;  %v5061_v19 = vcombine.low %v1019_v62, %v1029_v14  ;;  %6090 = vmatmul.mubr.bf16.gmra.mrb[16].mxu0 %v6617_v61  ;;  %v1077_v61 = vsel %vm6935_vm2, %v1072_v51, %v1076_v37  ;;  %v1114_v62 = vrot.slane %v1112_v6, 5  ;;  %v6630_v14 = vld [vmem:[%s7680_s1 + $0x1f8] sm:$0xff]   ;;  %v1138_v36 = vrot.slane %v1136_v28, 5 }
  0xb1   : > { %6093 = vmatprep.mubr.bf16.mxu0 %v6619_v4  ;;  %v1067_v55 = vsel %vm6935_vm2, %v1062_v48, %v1066_v32  ;;  %v1090_v56 = vrot.slane %v1088_v49, 5  ;;  %v1108_v13 = vrot.slane %v1106_v5, 5  ;;  %6119 = vmatprep.subr.bf16.mxu0 %v6630_v14  ;;  %v1142_v37 = vrot.slane %v1140_v29, 4  ;;  %v6636_v5 = vld [vmem:[%s7680_s1 + $0xe8] sm:$0xff]  }
  0xb2   : > { %v5063_v3 = vcombine.low %v1067_v55, %v1077_v61  ;;  %v1119_v27 = vor.u32 %v1118_v17, %v1114_v62  ;;  %6120 = vmatpush3.bf16.msra.mxu0 %v6630_v14  ;;  %v1170_v59 = vshll.u32 %v912_v44, 16  ;;  %v6631_v61 = vld [vmem:[%s6860_s4 + $0xd8] sm:$0xff]   ;;  %v916_v17 = vld [vmem:[%s6860_s4 + $0x84] sm:$0xf] }
  0xb3   : > { %5916 = vmatpush3.bf16.msra.mxu1 %v6620_v50  ;;  %v1092_v50 = vshrl.u32 %v902_v43, 16  ;;  %v1091_v15 = vsel %vm6935_vm2, %v1086_v7, %v1090_v56  ;;  %v911_v43 = vld [vmem:[%s6860_s4 + $0x70] sm:$0xf]  ;;  %6153 = vmatprep.subr.bf16.mxu0 %v7262_v54  ;;  %v1202_v28 = vshll.u32 %v916_v17, 16 }
  0xb4   : > { %5917 = vmatprep.subr.bf16.mxu1 %v6624_v8  ;;  %v1120_v35 = vrot.slane %v1119_v27, 4  ;;  %v1160_v48 = vshll.u32 %v911_v43, 16  ;;  %v1164_v53 = vshrl.u32 %v911_v43, 16  ;;  %v1199_v27 = vshrl.u32 %v916_v17, 16 }
  0xb5   : > { %v1094_v57 = vrot.slane %v1092_v50, 4  ;;  %v6629_v50 = vld [vmem:[%s6860_s4 + $0xc0] sm:$0xff]  }
  0xb6   : > { %5886 = vmatmul.mubr.bf16.gmra.mrb[4].mxu1 %v5061_v19  ;;  %v907_v19 = vld [vmem:[%s6860_s4 + $0x60] sm:$0xf]  ;;  %v1125_v46 = vsel %vm6935_vm2, %v1120_v35, %v1124_v18  ;;  %v1166_v63 = vrot.slane %v1164_v53, 4  ;;  %v1201_v35 = vrot.slane %v1199_v27, 4 }
  0xb7   : > { %5918 = vmatpush3.bf16.msra.mxu1 %v6624_v8  ;;  %5889 = vmatprep.mubr.bf16.mxu1 %v5062_v47  ;;  %v1095_v4 = vor.u32 %v1094_v57, %v1090_v56  ;;  %v1105_v8 = vrot.slane %v1103_v2, 4  ;;  %v1127_v24 = vshrl.u32 %v907_v19, 16  ;;  %v1130_v25 = vshll.u32 %v907_v19, 16 }
  0xb8   : > { %5919 = vmatprep.subr.bf16.mxu1 %v6628_v39  ;;  %6094 = vmatmul.mubr.bf16.gmra.mrb[20].mxu0 %v6621_v34  ;;  %v6632_v34 = vld [vmem:[%s7680_s1 + $0xe0] sm:$0xff]   ;;  %v1143_v47 = vor.u32 %v1142_v37, %v1138_v36  ;;  %v1162_v57 = vrot.slane %v1160_v48, 5  ;;  %v1172_v2 = vrot.slane %v1170_v59, 5 }
  0xb9   : > { %6097 = vmatprep.mubr.bf16.mxu0 %v6623_v40  ;;  %v1096_v12 = vrot.slane %v1095_v4, 4  ;;  %v1109_v21 = vor.u32 %v1108_v13, %v1105_v8  ;;  %v1129_v31 = vrot.slane %v1127_v24, 4  ;;  %v1132_v32 = vrot.slane %v1130_v25, 5  ;;  %v914_v4 = vld [vmem:[%s6860_s4 + $0x7c] sm:$0xf]  ;;  %v6633_v24 = vld [vmem:[%s6860_s4 + $0xe4] sm:$0xff]  }
  0xba   : > { %v1154_v40 = vshll.u32 %v910_v38, 16  ;;  %v1144_v55 = vrot.slane %v1143_v47, 4  ;;  %v1167_v7 = vor.u32 %v1166_v63, %v1162_v57  ;;  %v915_v8 = vld [vmem:[%s6860_s4 + $0x80] sm:$0x1]  ;;  %v1188_v13 = vshrl.u32 %v914_v4, 16  ;;  %v6640_v47 = vld [vmem:[%s7680_s1 + $0xf0] sm:$0xff]  }
  0xbb   : > { %5920 = vmatpush3.bf16.msra.mxu1 %v6628_v39  ;;  %v1101_v20 = vsel %vm6935_vm2, %v1096_v12, %v1100_v0  ;;  %v1110_v30 = vrot.slane %v1109_v21, 4  ;;  %v1133_v41 = vor.u32 %v1132_v32, %v1129_v31  ;;  %v1184_v12 = vshll.u32 %v914_v4, 16  ;;  %v6635_v31 = vld [vmem:[%s6860_s4 + $0xf0] sm:$0xff]   ;;  %v922_v4 = vld [vmem:[%s6860_s4 + $0x9c] sm:$0xf] }
  0xbc   : > { %v5064_v26 = vcombine.low %v1091_v15, %v1101_v20  ;;  %5921 = vmatprep.subr.bf16.mxu1 %v6632_v34  ;;  %v1156_v56 = vrot.slane %v1154_v40, 5  ;;  %v1149_v0 = vsel %vm6935_vm2, %v1144_v55, %v1148_v42  ;;  %v1168_v14 = vrot.slane %v1167_v7, 4  ;;  %v6638_v42 = vld [vmem:[%s7680_s1 + $0x208] sm:$0xff]  }
  0xbd   : > { %v1115_v39 = vsel %vm6935_vm2, %v1110_v30, %v1114_v62  ;;  %v1134_v51 = vrot.slane %v1133_v41, 4  ;;  %v1194_v62 = vshll.u32 %v915_v8, 16  ;;  %v1186_v19 = vrot.slane %v1184_v12, 5  ;;  %v6639_v8 = vld [vmem:[%s6860_s4 + $0x108] sm:$0xff]  }
  0xbe   : > { %5890 = vmatmul.mubr.bf16.gmra.mrb[8].mxu1 %v5063_v3  ;;  %v5065_v49 = vcombine.low %v1115_v39, %v1125_v46  ;;  %v1157_v1 = vor.u32 %v1156_v56, %v1153_v52  ;;  %v913_v3 = vld [vmem:[%s6860_s4 + $0x78] sm:$0xf]  ;;  %v1190_v20 = vrot.slane %v1188_v13, 4  ;;  %v1173_v23 = vsel %vm6935_vm2, %v1168_v14, %v1172_v2  ;;  %v919_v46 = vld [vmem:[%s6860_s4 + $0x90] sm:$0xf] }
  0xbf   : > { %5893 = vmatprep.mubr.bf16.mxu1 %v5064_v26  ;;  %5922 = vmatpush3.bf16.msra.mxu1 %v6632_v34  ;;  %v1139_v60 = vsel %vm6935_vm2, %v1134_v51, %v1138_v36  ;;  %v1175_v9 = vshrl.u32 %v913_v3, 16  ;;  %v1178_v10 = vshll.u32 %v913_v3, 16  ;;  %v1196_v21 = vrot.slane %v1194_v62, 5  ;;  %v918_v26 = vld [vmem:[%s6860_s4 + $0x8c] sm:$0x1] }
  0xc0   : > { %6098 = vmatmul.mubr.bf16.gmra.mrb[24].mxu0 %v6625_v11  ;;  %v5066_v6 = vcombine.low %v1139_v60, %v1149_v0  ;;  %v1158_v11 = vrot.slane %v1157_v1, 4  ;;  %5923 = vmatprep.subr.bf16.mxu1 %v6636_v5  ;;  %v1191_v30 = vor.u32 %v1190_v20, %v1186_v19  ;;  %v1208_v32 = vshll.u32 %v917_v22, 16  ;;  %v6637_v1 = vld [vmem:[%s6860_s4 + $0xfc] sm:$0xff]  }
  0xc1   : > { %6101 = vmatprep.mubr.bf16.mxu0 %v6627_v16  ;;  %v1177_v15 = vrot.slane %v1175_v9, 4  ;;  %v1180_v16 = vrot.slane %v1178_v10, 5  ;;  %v1204_v36 = vrot.slane %v1202_v28, 5  ;;  %v1218_v37 = vshll.u32 %v918_v26, 16  ;;  %v924_v9 = vld [vmem:[%s6860_s4 + $0xa4] sm:$0x1] }
  0xc2   : > { %v1163_v18 = vsel %vm6935_vm2, %v1158_v11, %v1162_v57  ;;  %v1192_v38 = vrot.slane %v1191_v30, 4  ;;  %v1210_v39 = vrot.slane %v1208_v32, 5  ;;  %v1214_v41 = vrot.slane %v1212_v33, 4  ;;  %v926_v28 = vld [vmem:[%s6860_s4 + $0xac] sm:$0xf] }
  0xc3   : > { %5924 = vmatpush3.bf16.msra.mxu1 %v6636_v5  ;;  %v1181_v25 = vor.u32 %v1180_v16, %v1177_v15  ;;  %v5067_v29 = vcombine.low %v1163_v18, %v1173_v23  ;;  %v1205_v44 = vor.u32 %v1204_v36, %v1201_v35  ;;  %v1220_v45 = vrot.slane %v1218_v37, 5  ;;  %v923_v5 = vld [vmem:[%s6860_s4 + $0xa0] sm:$0xf]  ;;  %v6641_v37 = vld [vmem:[%s6860_s4 + $0x114] sm:$0xff]  }
  0xc4   : > { %v1197_v40 = vsel %vm6935_vm2, %v1192_v38, %v1196_v21  ;;  %v1215_v48 = vor.u32 %v1214_v41, %v1210_v39  ;;  %v1223_v51 = vshrl.u32 %v919_v46, 16  ;;  %v1226_v52 = vshll.u32 %v919_v46, 16  ;;  %5925 = vmatprep.subr.bf16.mxu1 %v6640_v47  ;;  %v6642_v21 = vld [vmem:[%s7680_s1 + $0x210] sm:$0xff]   ;;  %v6643_v46 = vld [vmem:[%s6860_s4 + $0x120] sm:$0xff]  }
  0xc5   : > { %v1182_v34 = vrot.slane %v1181_v25, 4  ;;  %v1206_v55 = vrot.slane %v1205_v44, 4  ;;  %v1247_v10 = vshrl.u32 %v922_v4, 16  ;;  %v1250_v13 = vshll.u32 %v922_v4, 16  ;;  %v925_v25 = vld [vmem:[%s6860_s4 + $0xa8] sm:$0xf] }
  0xc6   : > { %5894 = vmatmul.mubr.bf16.gmra.mrb[12].mxu1 %v5065_v49  ;;  %v920_v49 = vld [vmem:[%s6860_s4 + $0x94] sm:$0xf]  ;;  %v1216_v59 = vrot.slane %v1215_v48, 4  ;;  %v1225_v60 = vrot.slane %v1223_v51, 4  ;;  %v1256_v62 = vshll.u32 %v923_v5, 16  ;;  %v1260_v16 = vshrl.u32 %v923_v5, 16 }
  0xc7   : > { %5897 = vmatprep.mubr.bf16.mxu1 %v5066_v6  ;;  %v1187_v43 = vsel %vm6935_vm2, %v1182_v34, %v1186_v19  ;;  %v1232_v56 = vshll.u32 %v920_v49, 16  ;;  %v1236_v57 = vshrl.u32 %v920_v49, 16  ;;  %v1211_v0 = vsel %vm6935_vm2, %v1206_v55, %v1210_v39  ;;  %5926 = vmatpush3.bf16.msra.mxu1 %v6640_v47  ;;  %v928_v47 = vld [vmem:[%s6860_s4 + $0xb4] sm:$0xf]  ;;  %v930_v51 = vld [vmem:[%s6860_s4 + $0xbc] sm:$0x1] }
  0xc8   : > { %6102 = vmatmul.mubr.bf16.gmra.mrb[28].mxu0 %v6629_v50  ;;  %v921_v50 = vld [vmem:[%s6860_s4 + $0x98] sm:$0x1]  ;;  %v5068_v53 = vcombine.low %v1187_v43, %v1197_v40  ;;  %v1249_v15 = vrot.slane %v1247_v10, 4  ;;  %v1266_v17 = vshll.u32 %v924_v9, 16  ;;  %v1252_v19 = vrot.slane %v1250_v13, 5  ;;  %v6645_v13 = vld [vmem:[%s6860_s4 + $0x12c] sm:$0xff]  }
  0xc9   : > { %6121 = vmatprep.mubr.bf16.mxu0 %v6631_v61  ;;  %v1228_v61 = vrot.slane %v1226_v52, 5  ;;  %v1242_v63 = vshll.u32 %v921_v50, 16  ;;  %v1234_v2 = vrot.slane %v1232_v56, 5  ;;  %v1238_v3 = vrot.slane %v1236_v57, 4  ;;  %v929_v50 = vld [vmem:[%s6860_s4 + $0xb8] sm:$0xf] }
  0xca   : > { %v1258_v20 = vrot.slane %v1256_v62, 5  ;;  %v1262_v23 = vrot.slane %v1260_v16, 4  ;;  %v1253_v27 = vor.u32 %v1252_v19, %v1249_v15  ;;  %v1271_v30 = vshrl.u32 %v925_v25, 16  ;;  %v6651_v16 = vld [vmem:[%s7680_s1 + $0x220] sm:$0xff]  }
  0xcb   : > { %v1229_v6 = vor.u32 %v1228_v61, %v1225_v60  ;;  %v1244_v7 = vrot.slane %v1242_v63, 5  ;;  %v1239_v12 = vor.u32 %v1238_v3, %v1234_v2  ;;  %v1280_v34 = vshll.u32 %v926_v28, 16 }
  0xcc   : > { %v1263_v33 = vor.u32 %v1262_v23, %v1258_v20  ;;  %v1284_v35 = vshrl.u32 %v926_v28, 16  ;;  %v1254_v36 = vrot.slane %v1253_v27, 4  ;;  %v1273_v38 = vrot.slane %v1271_v30, 4  ;;  %v6653_v23 = vld [vmem:[%s6860_s4 + $0x150] sm:$0xff]   ;;  %v6684_v27 = vld [vmem:[%s7680_s1 + $0x108] sm:$0xff]   ;;  %v6655_v28 = vld [vmem:[%s6860_s4 + $0x15c] sm:$0xff]  }
  0xcd   : > { %v1230_v14 = vrot.slane %v1229_v6, 4  ;;  %v1240_v18 = vrot.slane %v1239_v12, 4  ;;  %v1282_v44 = vrot.slane %v1280_v34, 5  ;;  %v1295_v52 = vshrl.u32 %v928_v47, 16  ;;  %v6666_v30 = vld [vmem:[%s7680_s1 + $0x238] sm:$0xff]  }
  0xce   : > { %5898 = vmatmul.mubr.bf16.gmra.mrb[16].mxu1 %v5067_v29  ;;  %v927_v29 = vld [vmem:[%s6860_s4 + $0xb0] sm:$0x1]  ;;  %v1264_v43 = vrot.slane %v1263_v33, 4  ;;  %v1259_v40 = vsel %vm6935_vm2, %v1254_v36, %v1258_v20  ;;  %v1298_v56 = vshll.u32 %v928_v47, 16  ;;  %v1304_v57 = vshll.u32 %v929_v50, 16  ;;  %v6656_v20 = vld [vmem:[%s7680_s1 + $0x228] sm:$0xff]  }
  0xcf   : > { %5901 = vmatprep.mubr.bf16.mxu1 %v5068_v53  ;;  %v1235_v22 = vsel %vm6935_vm2, %v1230_v14, %v1234_v2  ;;  %v1245_v26 = vsel %vm6935_vm2, %v1240_v18, %v1244_v7  ;;  %v1290_v41 = vshll.u32 %v927_v29, 16  ;;  %v1297_v61 = vrot.slane %v1295_v52, 4  ;;  %v6648_v14 = vld [vmem:[%s6860_s4 + $0x138] sm:$0xff]   ;;  %v6657_v29 = vld [vmem:[%s6860_s4 + $0x1c8] sm:$0xff]   ;;  %v5459_v33 = vld [vmem:[%s6860_s4 + $0x10] sm:$0xf] }
  0xd0   : > { %6122 = vmatmul.mubr.bf16.vlgmr.msra.gmra.mrb[0].mxu0 %v6633_v24  ;;  %v1268_v24 = vrot.slane %v1266_v17, 5  ;;  %v5070_v32 = vcombine.low %v1235_v22, %v1245_v26  ;;  %v1308_v63 = vshrl.u32 %v929_v50, 16  ;;  %v1300_v3 = vrot.slane %v1298_v56, 5  ;;  %v6647_v18 = vld [vmem:[%s6860_s4 + $0x198] sm:$0xff]   ;;  %v6650_v22 = vld [vmem:[%s6860_s4 + $0x144] sm:$0xff]  }
  0xd1   : > { %6154 = vmatpush3.bf16.msra.mxu0 %v7262_v54  ;;  %6125 = vmatprep.mubr.bf16.mxu0 %v6635_v31  ;;  %v1221_v54 = vsel %vm6935_vm2, %v1216_v59, %v1220_v45  ;;  %v1274_v31 = vshll.u32 %v925_v25, 16  ;;  %v1286_v45 = vrot.slane %v1284_v35, 4  ;;  %v1292_v49 = vrot.slane %v1290_v41, 5  ;;  %v6661_v25 = vld [vmem:[%s7680_s1 + $0x230] sm:$0xff]   ;;  %v6654_v26 = vld [vmem:[%s6860_s4 + $0x1bc] sm:$0xff]  }
  0xd2   : > { %6155 = vmatprep.subr.bf16.mxu0 %v6638_v42  ;;  %v5069_v11 = vcombine.low %v1211_v0, %v1221_v54  ;;  %v1269_v53 = vsel %vm6935_vm2, %v1264_v43, %v1268_v24  ;;  %v6646_v0 = vld [vmem:[%s7680_s1 + $0x218] sm:$0xff]   ;;  %v1306_v4 = vrot.slane %v1304_v57, 5  ;;  %v1314_v5 = vshll.u32 %v930_v51, 16  ;;  %v6652_v24 = vld [vmem:[%s6860_s4 + $0x1b0] sm:$0xff]   ;;  %v5463_v51 = vld [vmem:[%s6860_s4 + $0x20] sm:$0x1] }
  0xd3   : > { %v1276_v39 = vrot.slane %v1274_v31, 5  ;;  %v1287_v55 = vor.u32 %v1286_v45, %v1282_v44  ;;  %v5071_v59 = vcombine.low %v1259_v40, %v1269_v53  ;;  %v1310_v6 = vrot.slane %v1308_v63, 4  ;;  %v6658_v31 = vld [vmem:[%s6860_s4 + $0x168] sm:$0xff]   ;;  %v5460_v34 = vld [vmem:[%s6860_s4 + $0x14] sm:$0x1]  ;;  %v6663_v57 = vld [vmem:[%s6860_s4 + $0x180] sm:$0xff]  }
  0xd4   : > { %v1316_v9 = vrot.slane %v1314_v5, 5  ;;  %v4010_v41 = vshll.u32 %v5460_v34, 16  ;;  %v5462_v40 = vld [vmem:[%s6860_s4 + $0x1c] sm:$0xf]  ;;  %v6659_v56 = vld [vmem:[%s6860_s4 + $0x1d4] sm:$0xff]   ;;  %v4034_v63 = vshll.u32 %v5463_v51, 16 }
  0xd5   : > { %6156 = vmatpush3.bf16.msra.mxu0 %v6638_v42  ;;  %v6644_v42 = vld [vmem:[%s7680_s1 + $0xf8] sm:$0xff]   ;;  %v1277_v48 = vor.u32 %v1276_v39, %v1273_v38  ;;  %v1288_v2 = vrot.slane %v1287_v55, 4  ;;  %v4000_v38 = vshll.u32 %v5459_v33, 16  ;;  %v4004_v39 = vshrl.u32 %v5459_v33, 16  ;;  %v6665_v33 = vld [vmem:[%s6860_s4 + $0x18c] sm:$0xff]  }
  0xd6   : > { %5902 = vmatmul.mubr.bf16.gmra.mrb[20].mxu1 %v5069_v11  ;;  %6157 = vmatprep.subr.bf16.mxu0 %v6642_v21  ;;  %v1311_v11 = vor.u32 %v1310_v6, %v1306_v4  ;;  %v4012_v47 = vrot.slane %v4010_v41, 5  ;;  %v4024_v53 = vshll.u32 %v5462_v40, 16  ;;  %v4028_v55 = vshrl.u32 %v5462_v40, 16  ;;  %v5465_v6 = vld [vmem:[%s6860_s4 + $0x28] sm:$0xf] }
  0xd7   : > { %5905 = vmatprep.mubr.bf16.mxu1 %v5070_v32  ;;  %5927 = vmatprep.subr.bf16.mxu1 %v6644_v42  ;;  %v1278_v60 = vrot.slane %v1277_v48, 4  ;;  %v1293_v7 = vsel %vm6935_vm2, %v1288_v2, %v1292_v49  ;;  %v5458_v32 = vld [vmem:[%s6860_s4 + $0xc] sm:$0xf]  ;;  %v4002_v45 = vrot.slane %v4000_v38, 5  ;;  %v6660_v49 = vld [vmem:[%s6860_s4 + $0x174] sm:$0xff]  }
  0xd8   : > { %6126 = vmatmul.mubr.bf16.gmra.mrb[4].mxu0 %v6637_v1  ;;  %5928 = vmatpush3.bf16.msra.mxu1 %v6644_v42  ;;  %v6683_v1 = vld [vmem:[%s7680_s1 + $0x100] sm:$0xff]   ;;  %v1312_v62 = vrot.slane %v1311_v11, 4  ;;  %v3991_v35 = vshrl.u32 %v5458_v32, 16  ;;  %v3994_v36 = vshll.u32 %v5458_v32, 16  ;;  %v4026_v2 = vrot.slane %v4024_v53, 5  ;;  %v6664_v32 = vld [vmem:[%s6860_s4 + $0x1ec] sm:$0xff]  }
  0xd9   : > { %6129 = vmatprep.mubr.bf16.mxu0 %v6639_v8  ;;  %6158 = vmatpush3.bf16.msra.mxu0 %v6642_v21  ;;  %v1283_v54 = vsel %vm6935_vm2, %v1278_v60, %v1282_v44  ;;  %v1301_v8 = vor.u32 %v1300_v3, %v1297_v61  ;;  %v6649_v21 = vld [vmem:[%s6860_s4 + $0x1a4] sm:$0xff]   ;;  %v5461_v44 = vld [vmem:[%s6860_s4 + $0x18] sm:$0xf]  ;;  %v4030_v3 = vrot.slane %v4028_v55, 4 }
  0xda   : > { %6201 = vmatprep.subr.bf16.mxu1 %v6683_v1  ;;  %6159 = vmatprep.subr.bf16.mxu0 %v6646_v0  ;;  %v5072_v10 = vcombine.low %v1283_v54, %v1293_v7  ;;  %v1317_v17 = vsel %vm6935_vm2, %v1312_v62, %v1316_v9  ;;  %v3993_v42 = vrot.slane %v3991_v35, 4  ;;  %v3996_v43 = vrot.slane %v3994_v36, 5  ;;  %v5466_v7 = vld [vmem:[%s6860_s4 + $0x2c] sm:$0x1]  ;;  %v6687_v62 = vld [vmem:[%s7680_s1 + $0x120] sm:$0xff]  }
  0xdb   : > { %v1302_v12 = vrot.slane %v1301_v8, 4  ;;  %v4015_v48 = vshrl.u32 %v5461_v44, 16  ;;  %v4018_v52 = vshll.u32 %v5461_v44, 16  ;;  %v4036_v54 = vrot.slane %v4034_v63, 5  ;;  %v6662_v8 = vld [vmem:[%s6860_s4 + $0x1e0] sm:$0xff]   ;;  %v6688_v38 = vld [vmem:[%s7680_s1 + $0x128] sm:$0xff]  }
  0xdc   : > { %v3997_v50 = vor.u32 %v3996_v43, %v3993_v42  ;;  %v4031_v11 = vor.u32 %v4030_v3, %v4026_v2  ;;  %v5473_v63 = vld [vmem:[%s6860_s4 + $0x48] sm:$0xf] }
  0xdd   : > { %6160 = vmatpush3.bf16.msra.mxu0 %v6646_v0  ;;  %v1307_v15 = vsel %vm6935_vm2, %v1302_v12, %v1306_v4  ;;  %v4017_v61 = vrot.slane %v4015_v48, 4  ;;  %v5464_v4 = vld [vmem:[%s6860_s4 + $0x24] sm:$0xf] }
  0xde   : > { %5906 = vmatmul.mubr.bf16.gmra.mrb[24].mxu1 %v5071_v59  ;;  %v5073_v19 = vcombine.low %v1307_v15, %v1317_v17  ;;  %6161 = vmatprep.subr.bf16.mxu0 %v6651_v16  ;;  %v6686_v59 = vld [vmem:[%s7680_s1 + $0x118] sm:$0xff]   ;;  %v3998_v0 = vrot.slane %v3997_v50, 4  ;;  %v4039_v12 = vshrl.u32 %v5464_v4, 16  ;;  %v4048_v15 = vshll.u32 %v5465_v6, 16  ;;  %v5467_v17 = vld [vmem:[%s6860_s4 + $0x30] sm:$0xf] }
  0xdf   : > { %5909 = vmatprep.mubr.bf16.mxu1 %v5072_v10  ;;  %v6667_v50 = vld [vmem:[%s6860_s4 + $0x1f8] sm:$0xff]  }
  0xe0   : > { %6130 = vmatmul.mubr.bf16.gmra.mrb[8].mxu0 %v6641_v37  ;;  %v6685_v37 = vld [vmem:[%s7680_s1 + $0x110] sm:$0xff]   ;;  %v4003_v9 = vsel %vm6935_vm2, %v3998_v0, %v4002_v45 }
  0xe1   : > { %6133 = vmatprep.mubr.bf16.mxu0 %v6643_v46  ;;  %6162 = vmatpush3.bf16.msra.mxu0 %v6651_v16  ;;  %v4006_v46 = vrot.slane %v4004_v39, 4  ;;  %v4052_v16 = vshrl.u32 %v5465_v6, 16  ;;  %v5470_v39 = vld [vmem:[%s6860_s4 + $0x3c] sm:$0xf] }
  0xe2   : > { %6163 = vmatprep.subr.bf16.mxu0 %v6656_v20  ;;  %v4090_v55 = vshll.u32 %v5470_v39, 16 }
  0xe3   : > { %v4007_v60 = vor.u32 %v4006_v46, %v4002_v45  ;;  %v5471_v45 = vld [vmem:[%s6860_s4 + $0x40] sm:$0xf]  ;;  %v5472_v46 = vld [vmem:[%s6860_s4 + $0x44] sm:$0x1] }
  0xe4   : > { %v4092_v3 = vrot.slane %v4090_v55, 5  ;;  %v4106_v6 = vshll.u32 %v5472_v46, 16 }
  0xe5   : > { %6164 = vmatpush3.bf16.msra.mxu0 %v6656_v20  ;;  %v4008_v5 = vrot.slane %v4007_v60, 4  ;;  %v4032_v20 = vrot.slane %v4031_v11, 4  ;;  %v5475_v11 = vld [vmem:[%s6860_s4 + $0x50] sm:$0x1] }
  0xe6   : > { %5910 = vmatmul.mubr.bf16.gmra.mrb[28].mxu1 %v5073_v19  ;;  %6165 = vmatprep.subr.bf16.mxu0 %v6661_v25 }
  0xe7   : > { %5929 = vmatprep.mubr.bf16.mxu1 %v6647_v18 }
  0xe8   : > { %6134 = vmatmul.mubr.bf16.gmra.mrb[12].mxu0 %v6645_v13  ;;  %v4013_v13 = vsel %vm6935_vm2, %v4008_v5, %v4012_v47  ;;  %v4096_v5 = vshll.u32 %v5471_v45, 16 }
  0xe9   : > { %6137 = vmatprep.mubr.bf16.mxu0 %v6648_v14  ;;  %6166 = vmatpush3.bf16.msra.mxu0 %v6661_v25  ;;  %v4042_v14 = vshll.u32 %v5464_v4, 16  ;;  %v5522_v18 = vcombine.low %v4003_v9, %v4013_v13  ;;  %v4054_v25 = vrot.slane %v4052_v16, 4  ;;  %v5474_v4 = vld [vmem:[%s6860_s4 + $0x4c] sm:$0xf]  ;;  %v6668_v13 = vld [vmem:[%s6860_s4 + $0x204] sm:$0xff]  }
  0xea   : > { %6167 = vmatprep.subr.bf16.mxu0 %v6666_v30 }
  0xed   : > { %6168 = vmatpush3.bf16.msra.mxu0 %v6666_v30  ;;  %v4063_v30 = vshrl.u32 %v5467_v17, 16 }
  0xee   : > { %5930 = vmatmul.mubr.bf16.vlgmr.msra.gmra.mrb[0].mxu1 %v6649_v21  ;;  %v4041_v21 = vrot.slane %v4039_v12, 4  ;;  %v4114_v12 = vshll.u32 %v5473_v63, 16 }
  0xef   : > { %6209 = vmatpush3.bf16.msra.mxu1 %v6683_v1  ;;  %5933 = vmatprep.mubr.bf16.mxu1 %v6652_v24  ;;  %v4020_v1 = vrot.slane %v4018_v52, 5  ;;  %v4050_v24 = vrot.slane %v4048_v15, 5  ;;  %v4065_v41 = vrot.slane %v4063_v30, 4  ;;  %v4108_v15 = vrot.slane %v4106_v6, 5  ;;  %v6671_v6 = vld [vmem:[%s6860_s4 + $0x228] sm:$0xff]  }
  0xf0   : > { %6138 = vmatmul.mubr.bf16.gmra.mrb[16].mxu0 %v6650_v22  ;;  %6202 = vmatprep.subr.bf16.mxu1 %v6684_v27  ;;  %v5468_v22 = vld [vmem:[%s6860_s4 + $0x34] sm:$0xf] }
  0xf1   : > { %6141 = vmatprep.mubr.bf16.mxu0 %v6653_v23  ;;  %v4021_v10 = vor.u32 %v4020_v1, %v4017_v61  ;;  %v4044_v23 = vrot.slane %v4042_v14, 5  ;;  %v4055_v36 = vor.u32 %v4054_v25, %v4050_v24  ;;  %v4072_v43 = vshll.u32 %v5468_v22, 16  ;;  %v6689_v61 = vld [vmem:[%s7680_s1 + $0x130] sm:$0xff]  }
  0xf2   : > { %v4076_v44 = vshrl.u32 %v5468_v22, 16  ;;  %v4116_v22 = vrot.slane %v4114_v12, 5 }
  0xf3   : > { %6210 = vmatpush3.bf16.msra.mxu1 %v6684_v27  ;;  %v4022_v19 = vrot.slane %v4021_v10, 4  ;;  %v5469_v27 = vld [vmem:[%s6860_s4 + $0x38] sm:$0x1]  ;;  %v4045_v35 = vor.u32 %v4044_v23, %v4041_v21  ;;  %v4056_v40 = vrot.slane %v4055_v36, 4  ;;  %v4074_v52 = vrot.slane %v4072_v43, 5 }
  0xf4   : > { %6203 = vmatprep.subr.bf16.mxu1 %v6685_v37  ;;  %v4082_v48 = vshll.u32 %v5469_v27, 16  ;;  %v4078_v53 = vrot.slane %v4076_v44, 4  ;;  %v4120_v23 = vshll.u32 %v5474_v4, 16  ;;  %v4130_v27 = vshll.u32 %v5475_v11, 16 }
  0xf5   : > { %v4046_v47 = vrot.slane %v4045_v35, 4  ;;  %v5479_v35 = vld [vmem:[%s6860_s4 + $0x60] sm:$0xf] }
  0xf6   : > { %5934 = vmatmul.mubr.bf16.gmra.mrb[4].mxu1 %v6654_v26  ;;  %v4058_v26 = vshll.u32 %v5466_v7, 16  ;;  %v4111_v7 = vshrl.u32 %v5473_v63, 16 }
  0xf7   : > { %5937 = vmatprep.mubr.bf16.mxu1 %v6657_v29  ;;  %6211 = vmatpush3.bf16.msra.mxu1 %v6685_v37  ;;  %v4037_v29 = vsel %vm6935_vm2, %v4032_v20, %v4036_v54  ;;  %v4100_v54 = vshrl.u32 %v5471_v45, 16 }
  0xf8   : > { %6142 = vmatmul.mubr.bf16.gmra.mrb[20].mxu0 %v6655_v28  ;;  %6204 = vmatprep.subr.bf16.mxu1 %v6686_v59  ;;  %v4027_v28 = vsel %vm6935_vm2, %v4022_v19, %v4026_v2  ;;  %v4060_v37 = vrot.slane %v4058_v26, 5  ;;  %v4079_v2 = vor.u32 %v4078_v53, %v4074_v52  ;;  %v4113_v16 = vrot.slane %v4111_v7, 4  ;;  %v6669_v19 = vld [vmem:[%s6860_s4 + $0x210] sm:$0xff]  }
  0xf9   : > { %6145 = vmatprep.mubr.bf16.mxu0 %v6658_v31  ;;  %v4066_v31 = vshll.u32 %v5467_v17, 16  ;;  %v7405_v34 = vcombine.low %v4027_v28, %v4037_v29  ;;  %v4102_v14 = vrot.slane %v4100_v54, 4  ;;  %v5476_v17 = vld [vmem:[%s6860_s4 + $0x54] sm:$0xf]  ;;  %v4124_v26 = vshrl.u32 %v5474_v4, 16 }
  0xfa   : > { %v4080_v9 = vrot.slane %v4079_v2, 4  ;;  %v5477_v28 = vld [vmem:[%s6860_s4 + $0x58] sm:$0xf]  ;;  %v4117_v30 = vor.u32 %v4116_v22, %v4113_v16  ;;  %v5483_v54 = vld [vmem:[%s6860_s4 + $0x70] sm:$0xf] }
  0xfb   : > { %6212 = vmatpush3.bf16.msra.mxu1 %v6686_v59  ;;  %v4068_v42 = vrot.slane %v4066_v31, 5  ;;  %v4084_v59 = vrot.slane %v4082_v48, 5  ;;  %v4122_v31 = vrot.slane %v4120_v23, 5  ;;  %v4144_v43 = vshll.u32 %v5477_v28, 16  ;;  %v5480_v48 = vld [vmem:[%s6860_s4 + $0x64] sm:$0xf] }
  0xfc   : > { %6205 = vmatprep.subr.bf16.mxu1 %v6687_v62  ;;  %v4148_v44 = vshrl.u32 %v5477_v28, 16  ;;  %v4172_v63 = vshrl.u32 %v5480_v48, 16  ;;  %v4196_v22 = vshrl.u32 %v5483_v54, 16  ;;  %v5486_v23 = vld [vmem:[%s6860_s4 + $0x7c] sm:$0xf] }
  0xfd   : > { %v4069_v51 = vor.u32 %v4068_v42, %v4065_v41  ;;  %v4085_v20 = vsel %vm6935_vm2, %v4080_v9, %v4084_v59  ;;  %v4118_v41 = vrot.slane %v4117_v30, 4  ;;  %v5487_v28 = vld [vmem:[%s6860_s4 + $0x80] sm:$0x1] }
  0xfe   : > { %5938 = vmatmul.mubr.bf16.gmra.mrb[8].mxu1 %v6659_v56  ;;  %v4051_v56 = vsel %vm6935_vm2, %v4046_v47, %v4050_v24  ;;  %v4198_v30 = vrot.slane %v4196_v22, 4 }
  0xff   : > { %5941 = vmatprep.mubr.bf16.mxu1 %v6662_v8  ;;  %6213 = vmatpush3.bf16.msra.mxu1 %v6687_v62  ;;  %v4070_v1 = vrot.slane %v4069_v51, 4  ;;  %v4098_v62 = vrot.slane %v4096_v5, 5  ;;  %v4150_v51 = vrot.slane %v4148_v44, 4 }
 0x100   : > { %6146 = vmatmul.mubr.bf16.gmra.mrb[24].mxu0 %v6660_v49  ;;  %6206 = vmatprep.subr.bf16.mxu1 %v6688_v38  ;;  %v4087_v49 = vshrl.u32 %v5470_v39, 16  ;;  %v4138_v39 = vshll.u32 %v5476_v17, 16 }
 0x101   : > { %6149 = vmatprep.mubr.bf16.mxu0 %v6663_v57  ;;  %v4061_v57 = vsel %vm6935_vm2, %v4056_v40, %v4060_v37  ;;  %v4075_v8 = vsel %vm6935_vm2, %v4070_v1, %v4074_v52  ;;  %v4103_v25 = vor.u32 %v4102_v14, %v4098_v62  ;;  %v4126_v37 = vrot.slane %v4124_v26, 4  ;;  %v5481_v52 = vld [vmem:[%s6860_s4 + $0x68] sm:$0x1]  ;;  %v6670_v1 = vld [vmem:[%s6860_s4 + $0x21c] sm:$0xff]   ;;  %v5485_v14 = vld [vmem:[%s6860_s4 + $0x78] sm:$0xf] }
 0x102   : > { %v4089_v60 = vrot.slane %v4087_v49, 4  ;;  %v5524_v0 = vcombine.low %v4051_v56, %v4061_v57  ;;  %v5525_v24 = vcombine.low %v4075_v8, %v4085_v20  ;;  %v4140_v47 = vrot.slane %v4138_v39, 5  ;;  %v5489_v39 = vld [vmem:[%s6860_s4 + $0x88] sm:$0xf] }
 0x103   : > { %6214 = vmatpush3.bf16.msra.mxu1 %v6688_v38  ;;  %v4104_v36 = vrot.slane %v4103_v25, 4  ;;  %v4132_v38 = vrot.slane %v4130_v27, 5  ;;  %v4127_v46 = vor.u32 %v4126_v37, %v4122_v31  ;;  %v4159_v57 = vshrl.u32 %v5479_v35, 16 }
 0x104   : > { %6207 = vmatprep.subr.bf16.mxu1 %v6689_v61  ;;  %v4093_v10 = vor.u32 %v4092_v3, %v4089_v60  ;;  %v4162_v60 = vshll.u32 %v5479_v35, 16  ;;  %v4178_v5 = vshll.u32 %v5481_v52, 16  ;;  %v4216_v37 = vshll.u32 %v5486_v23, 16  ;;  %v5490_v52 = vld [vmem:[%s6860_s4 + $0x8c] sm:$0x1] }
 0x105   : > { %v4109_v45 = vsel %vm6935_vm2, %v4104_v36, %v4108_v15  ;;  %v4128_v53 = vrot.slane %v4127_v46, 4  ;;  %v4161_v4 = vrot.slane %v4159_v57, 4  ;;  %v6673_v46 = vld [vmem:[%s6860_s4 + $0x240] sm:$0xff]  }
 0x106   : > { %5942 = vmatmul.mubr.bf16.gmra.mrb[12].mxu1 %v6664_v32  ;;  %v4094_v21 = vrot.slane %v4093_v10, 4  ;;  %v5478_v32 = vld [vmem:[%s6860_s4 + $0x5c] sm:$0x1]  ;;  %v4164_v8 = vrot.slane %v4162_v60, 5  ;;  %v5484_v10 = vld [vmem:[%s6860_s4 + $0x74] sm:$0x1] }
 0x107   : > { %5945 = vmatprep.mubr.bf16.mxu1 %v6667_v50  ;;  %6215 = vmatpush3.bf16.msra.mxu1 %v6689_v61  ;;  %v4154_v40 = vshll.u32 %v5478_v32, 16  ;;  %v4146_v50 = vrot.slane %v4144_v43, 5  ;;  %v4168_v61 = vshll.u32 %v5480_v48, 16  ;;  %v4133_v2 = vsel %vm6935_vm2, %v4128_v53, %v4132_v38  ;;  %v5488_v38 = vld [vmem:[%s6860_s4 + $0x84] sm:$0xf] }
 0x108   : > { %6150 = vmatmul.mubr.bf16.gmra.mrb[28].mxu0 %v6665_v33  ;;  %v4099_v29 = vsel %vm6935_vm2, %v4094_v21, %v4098_v62  ;;  %v4135_v33 = vshrl.u32 %v5476_v17, 16  ;;  %v4165_v15 = vor.u32 %v4164_v8, %v4161_v4  ;;  %v4180_v16 = vrot.slane %v4178_v5, 5  ;;  %v5491_v60 = vld [vmem:[%s6860_s4 + $0x90] sm:$0xf] }
 0x109   : > { %6169 = vmatprep.mubr.bf16.mxu0 %v5522_v18  ;;  %v6690_v18 = vld [vmem:[%s7680_s1 + $0x138] sm:$0xff]   ;;  %v5526_v49 = vcombine.low %v4099_v29, %v4109_v45  ;;  %v4156_v56 = vrot.slane %v4154_v40, 5  ;;  %v4151_v59 = vor.u32 %v4150_v51, %v4146_v50  ;;  %v4170_v9 = vrot.slane %v4168_v61, 5 }
 0x10a   : > { %6208 = vmatprep.subr.bf16.mxu1 %v6690_v18  ;;  %v4137_v42 = vrot.slane %v4135_v33, 4  ;;  %v4166_v25 = vrot.slane %v4165_v15, 4  ;;  %v4202_v27 = vshll.u32 %v5484_v10, 16  ;;  %v4210_v32 = vshll.u32 %v5485_v14, 16  ;;  %v5494_v15 = vld [vmem:[%s6860_s4 + $0x9c] sm:$0xf] }
 0x10b   : > { %6216 = vmatpush3.bf16.msra.mxu1 %v6690_v18  ;;  %v4152_v7 = vrot.slane %v4151_v59, 4  ;;  %v4192_v18 = vshll.u32 %v5483_v54, 16  ;;  %v7468_v48 = vrot.slane %v4216_v37, 5  ;;  %v4226_v51 = vshll.u32 %v5487_v28, 16 }
 0x10c   : > { %v4141_v55 = vor.u32 %v4140_v47, %v4137_v42  ;;  %v4171_v35 = vsel %vm6935_vm2, %v4166_v25, %v4170_v9  ;;  %v4204_v43 = vrot.slane %v4202_v27, 5  ;;  %v4212_v45 = vrot.slane %v4210_v32, 5  ;;  %v5496_v32 = vld [vmem:[%s6860_s4 + $0xa4] sm:$0x1] }
 0x10d   : > { %v4194_v26 = vrot.slane %v4192_v18, 5  ;;  %v4231_v53 = vshrl.u32 %v5488_v38, 16  ;;  %v4234_v57 = vshll.u32 %v5488_v38, 16  ;;  %v4240_v59 = vshll.u32 %v5489_v39, 16 }
 0x10e   : > { %5946 = vmatmul.mubr.bf16.gmra.mrb[16].mxu1 %v6668_v13  ;;  %v4142_v3 = vrot.slane %v4141_v55, 4  ;;  %v4174_v13 = vrot.slane %v4172_v63, 4  ;;  %v4228_v5 = vrot.slane %v4226_v51, 5  ;;  %v4250_v8 = vshll.u32 %v5490_v52, 16 }
 0x10f   : > { %5949 = vmatprep.mubr.bf16.mxu1 %v6669_v19  ;;  %v4157_v19 = vsel %vm6935_vm2, %v4152_v7, %v4156_v56  ;;  %v4199_v42 = vor.u32 %v4198_v30, %v4194_v26  ;;  %v4236_v54 = vrot.slane %v4234_v57, 5  ;;  %v4244_v7 = vshrl.u32 %v5489_v39, 16 }
 0x110   : > { %6170 = vmatmul.mubr.bf16.vlgmr.msra.gmra.mrb[0].mxu0 %v7405_v34  ;;  %v4123_v34 = vsel %vm6935_vm2, %v4118_v41, %v4122_v31  ;;  %v4147_v12 = vsel %vm6935_vm2, %v4142_v3, %v4146_v50  ;;  %v4175_v20 = vor.u32 %v4174_v13, %v4170_v9  ;;  %v4207_v31 = vshrl.u32 %v5485_v14, 16  ;;  %v6672_v41 = vld [vmem:[%s6860_s4 + $0x234] sm:$0xff]  }
 0x111   : > { %6173 = vmatprep.mubr.bf16.mxu0 %v5524_v0  ;;  %v5482_v0 = vld [vmem:[%s6860_s4 + $0x6c] sm:$0xf]  ;;  %v5527_v11 = vcombine.low %v4123_v34, %v4133_v2  ;;  %v5528_v33 = vcombine.low %v4147_v12, %v4157_v19  ;;  %v4200_v34 = vrot.slane %v4199_v42, 4  ;;  %v5492_v2 = vld [vmem:[%s6860_s4 + $0x94] sm:$0xf]  ;;  %v4255_v10 = vshrl.u32 %v5491_v60, 16 }
 0x112   : > { %v4183_v62 = vshrl.u32 %v5482_v0, 16  ;;  %v4186_v17 = vshll.u32 %v5482_v0, 16  ;;  %v4176_v29 = vrot.slane %v4175_v20, 4  ;;  %v4209_v44 = vrot.slane %v4207_v31, 4  ;;  %v5493_v9 = vld [vmem:[%s6860_s4 + $0x98] sm:$0x1] }
 0x113   : > { %v4205_v63 = vsel %vm6935_vm2, %v4200_v34, %v4204_v43  ;;  %v4264_v14 = vshll.u32 %v5492_v2, 16  ;;  %v4246_v18 = vrot.slane %v4244_v7, 4  ;;  %v4257_v19 = vrot.slane %v4255_v10, 4  ;;  %v5501_v7 = vld [vmem:[%s6860_s4 + $0xb8] sm:$0xf] }
 0x114   : > { %v4185_v21 = vrot.slane %v4183_v62, 4  ;;  %v4181_v47 = vsel %vm6935_vm2, %v4176_v29, %v4180_v16  ;;  %v4213_v50 = vor.u32 %v4212_v45, %v4209_v44  ;;  %v4258_v62 = vshll.u32 %v5491_v60, 16  ;;  %v6675_v16 = vld [vmem:[%s6860_s4 + $0x2c4] sm:$0xff]  }
 0x115   : > { %v5529_v61 = vcombine.low %v4171_v35, %v4181_v47  ;;  %v4268_v20 = vshrl.u32 %v5492_v2, 16  ;;  %v4274_v29 = vshll.u32 %v5493_v9, 16  ;;  %v4282_v35 = vshll.u32 %v5494_v15, 16 }
 0x116   : > { %5950 = vmatmul.mubr.bf16.gmra.mrb[20].mxu1 %v6670_v1  ;;  %v4214_v0 = vrot.slane %v4213_v50, 4  ;;  %v4233_v1 = vrot.slane %v4231_v53, 4  ;;  %v4260_v25 = vrot.slane %v4258_v62, 5  ;;  %v5499_v53 = vld [vmem:[%s6860_s4 + $0xb0] sm:$0x1] }
 0x117   : > { %5953 = vmatprep.mubr.bf16.mxu1 %v6671_v6  ;;  %v4242_v6 = vrot.slane %v4240_v59, 5  ;;  %v4270_v28 = vrot.slane %v4268_v20, 4  ;;  %v4276_v39 = vrot.slane %v4274_v29, 5  ;;  %v4284_v44 = vrot.slane %v4282_v35, 5 }
 0x118   : > { %6174 = vmatmul.mubr.bf16.gmra.mrb[4].mxu0 %v5525_v24  ;;  %v4188_v24 = vrot.slane %v4186_v17, 5  ;;  %v4237_v13 = vor.u32 %v4236_v54, %v4233_v1  ;;  %v4219_v17 = vsel %vm6935_vm2, %v4214_v0, %v7468_v48  ;;  %v4261_v31 = vor.u32 %v4260_v25, %v4257_v19 }
 0x119   : > { %6177 = vmatprep.mubr.bf16.mxu0 %v5526_v49  ;;  %v4220_v49 = vshrl.u32 %v5486_v23, 16  ;;  %v4252_v23 = vrot.slane %v4250_v8, 5  ;;  %v4247_v27 = vor.u32 %v4246_v18, %v4242_v6  ;;  %v4336_v19 = vshll.u32 %v5501_v7, 16 }
 0x11a   : > { %v4189_v36 = vor.u32 %v4188_v24, %v4185_v21  ;;  %v5495_v21 = vld [vmem:[%s6860_s4 + $0xa0] sm:$0xf]  ;;  %v4238_v22 = vrot.slane %v4237_v13, 4  ;;  %v4266_v24 = vrot.slane %v4264_v14, 5  ;;  %v4262_v42 = vrot.slane %v4261_v31, 4 }
 0x11b   : > { %v4222_v56 = vrot.slane %v4220_v49, 4  ;;  %v4248_v37 = vrot.slane %v4247_v27, 4  ;;  %v4292_v45 = vshrl.u32 %v5495_v21, 16  ;;  %v5498_v49 = vld [vmem:[%s6860_s4 + $0xac] sm:$0xf]  ;;  %v4340_v20 = vshrl.u32 %v5501_v7, 16 }
 0x11c   : > { %v4190_v40 = vrot.slane %v4189_v36, 4  ;;  %v4243_v30 = vsel %vm6935_vm2, %v4238_v22, %v4242_v6  ;;  %v5497_v36 = vld [vmem:[%s6860_s4 + $0xa8] sm:$0xf]  ;;  %v4271_v38 = vor.u32 %v4270_v28, %v4266_v24  ;;  %v4316_v54 = vshrl.u32 %v5498_v49, 16  ;;  %v5502_v14 = vld [vmem:[%s6860_s4 + $0xbc] sm:$0x1] }
 0x11d   : > { %v4223_v4 = vor.u32 %v4222_v56, %v7468_v48  ;;  %v4298_v48 = vshll.u32 %v5496_v32, 16  ;;  %v4294_v52 = vrot.slane %v4292_v45, 4  ;;  %v4267_v56 = vsel %vm6935_vm2, %v4262_v42, %v4266_v24  ;;  %v5504_v24 = vld [vmem:[%s6860_s4 + $0xc4] sm:$0xf] }
 0x11e   : > { %v4195_v55 = vsel %vm6935_vm2, %v4190_v40, %v4194_v26  ;;  %5954 = vmatmul.mubr.bf16.gmra.mrb[24].mxu1 %v6672_v41  ;;  %v4288_v41 = vshll.u32 %v5495_v21, 16  ;;  %v4272_v47 = vrot.slane %v4271_v38, 4  ;;  %v4303_v59 = vshrl.u32 %v5497_v36, 16 }
 0x11f   : > { %5957 = vmatprep.mubr.bf16.mxu1 %v6673_v46  ;;  %v5530_v3 = vcombine.low %v4195_v55, %v4205_v63  ;;  %v4224_v12 = vrot.slane %v4223_v4, 4  ;;  %v4253_v46 = vsel %vm6935_vm2, %v4248_v37, %v4252_v23  ;;  %v6676_v55 = vld [vmem:[%s6860_s4 + $0x2d0] sm:$0xff]   ;;  %v4306_v60 = vshll.u32 %v5497_v36, 16  ;;  %v6677_v63 = vld [vmem:[%s6860_s4 + $0x2dc] sm:$0xff]  }
 0x120   : > { %6178 = vmatmul.mubr.bf16.gmra.mrb[8].mxu0 %v5527_v11  ;;  %v6674_v11 = vld [vmem:[%s6860_s4 + $0x24c] sm:$0xff]   ;;  %v4290_v40 = vrot.slane %v4288_v41, 5  ;;  %v5532_v50 = vcombine.low %v4243_v30, %v4253_v46  ;;  %v4277_v57 = vsel %vm6935_vm2, %v4272_v47, %v4276_v39  ;;  %v4300_v2 = vrot.slane %v4298_v48, 5  ;;  %v6679_v36 = vld [vmem:[%s6860_s4 + $0x2f4] sm:$0xff]   ;;  %v5505_v39 = vld [vmem:[%s6860_s4 + $0xc8] sm:$0x1] }
 0x121   : > { %6181 = vmatprep.mubr.bf16.mxu0 %v5528_v33  ;;  %v4229_v26 = vsel %vm6935_vm2, %v4224_v12, %v4228_v5  ;;  %v4279_v33 = vshrl.u32 %v5494_v15, 16  ;;  %v4305_v4 = vrot.slane %v4303_v59, 4  ;;  %v4308_v5 = vrot.slane %v4306_v60, 5  ;;  %v6678_v30 = vld [vmem:[%s6860_s4 + $0x2e8] sm:$0xff]  }
 0x122   : > { %v5531_v34 = vcombine.low %v4219_v17, %v4229_v26  ;;  %v4295_v1 = vor.u32 %v4294_v52, %v4290_v40  ;;  %v4322_v6 = vshll.u32 %v5499_v53, 16  ;;  %v5533_v8 = vcombine.low %v4267_v56, %v4277_v57  ;;  %v6680_v56 = vld [vmem:[%s6860_s4 + $0x300] sm:$0xff]  }
 0x123   : > { %v4281_v43 = vrot.slane %v4279_v33, 4  ;;  %v4309_v13 = vor.u32 %v4308_v5, %v4305_v4  ;;  %v4318_v62 = vrot.slane %v4316_v54, 4  ;;  %v4338_v26 = vrot.slane %v4336_v19, 5 }
 0x124   : > { %v4296_v9 = vrot.slane %v4295_v1, 4  ;;  %v4324_v23 = vrot.slane %v4322_v6, 5  ;;  %v4342_v27 = vrot.slane %v4340_v20, 4  ;;  %v4346_v28 = vshll.u32 %v5502_v14, 16 }
 0x125   : > { %v4285_v51 = vor.u32 %v4284_v44, %v4281_v43  ;;  %v4310_v21 = vrot.slane %v4309_v13, 4  ;;  %v4360_v42 = vshll.u32 %v5504_v24, 16  ;;  %v4364_v45 = vshrl.u32 %v5504_v24, 16 }
 0x126   : > { %5958 = vmatmul.mubr.bf16.gmra.mrb[28].mxu1 %v6674_v11  ;;  %v4301_v17 = vsel %vm6935_vm2, %v4296_v9, %v4300_v2  ;;  %v4343_v37 = vor.u32 %v4342_v27, %v4338_v26  ;;  %v4348_v38 = vrot.slane %v4346_v28, 5 }
 0x127   : > { %5993 = vmatprep.mubr.bf16.mxu1 %v6675_v16  ;;  %v4286_v0 = vrot.slane %v4285_v51, 4  ;;  %v5503_v16 = vld [vmem:[%s6860_s4 + $0xc0] sm:$0xf] }
 0x128   : > { %6182 = vmatmul.mubr.bf16.gmra.mrb[12].mxu0 %v5529_v61  ;;  %v5500_v61 = vld [vmem:[%s6860_s4 + $0xb4] sm:$0xf]  ;;  %v4351_v29 = vshrl.u32 %v5503_v16, 16  ;;  %v4354_v35 = vshll.u32 %v5503_v16, 16  ;;  %v4344_v47 = vrot.slane %v4343_v37, 4 }
 0x129   : > { %6185 = vmatprep.mubr.bf16.mxu0 %v5530_v3  ;;  %v4312_v3 = vshll.u32 %v5498_v49, 16  ;;  %v4327_v11 = vshrl.u32 %v5500_v61, 16  ;;  %v4291_v12 = vsel %vm6935_vm2, %v4286_v0, %v4290_v40  ;;  %v4330_v15 = vshll.u32 %v5500_v61, 16 }
 0x12a   : > { %v5534_v31 = vcombine.low %v4291_v12, %v4301_v17  ;;  %v4353_v41 = vrot.slane %v4351_v29, 4  ;;  %v4356_v44 = vrot.slane %v4354_v35, 5  ;;  %v4362_v40 = vrot.slane %v4360_v42, 5 }
 0x12b   : > { %v4314_v10 = vrot.slane %v4312_v3, 5  ;;  %v4329_v18 = vrot.slane %v4327_v11, 4  ;;  %v4332_v25 = vrot.slane %v4330_v15, 5  ;;  %v4349_v52 = vsel %vm6935_vm2, %v4344_v47, %v4348_v38  ;;  %v6682_v3 = vld [vmem:[%s6860_s4 + $0x318] sm:$0xff]  }
 0x12c   : > { %v4357_v49 = vor.u32 %v4356_v44, %v4353_v41 }
 0x12d   : > { %v4319_v22 = vor.u32 %v4318_v62, %v4314_v10  ;;  %v4333_v33 = vor.u32 %v4332_v25, %v4329_v18  ;;  %v4315_v46 = vsel %vm6935_vm2, %v4310_v21, %v4314_v10  ;;  %v7549_v18 = vld [vmem:[%s7681_s2] ss:$0 sm:$0xff] }
 0x12e   : > { %5994 = vmatmul.mubr.bf16.vlgmr.msra.gmra.mrb[16].mxu1 %v6676_v55  ;;  %v4358_v59 = vrot.slane %v4357_v49, 4 }
 0x12f   : > { %5997 = vmatprep.mubr.bf16.mxu1 %v6677_v63  ;;  %v4320_v32 = vrot.slane %v4319_v22, 4  ;;  %v4334_v43 = vrot.slane %v4333_v33, 4  ;;  %v6681_v63 = vld [vmem:[%s6860_s4 + $0x30c] sm:$0xff]   ;;  %s164_s4 = sand.u32 1, %s6745_s13  }
 0x130   : > { %6186 = vmatmul.mubr.bf16.gmra.mrb[16].mxu0 %v5531_v34  ;;  %v4366_v34 = vrot.slane %v4364_v45, 4  ;;  %v4363_v0 = vsel %vm6935_vm2, %v4358_v59, %v4362_v40  ;;  %s4943_s10 = sshll.u32 %s164_s4, 8  ;;  %s7638_s25 = scalar_lea.sflag [#allocation3], %s164_s4 }
 0x131   : > { %6189 = vmatprep.mubr.bf16.mxu0 %v5532_v50  ;;  %v4325_v48 = vsel %vm6935_vm2, %v4320_v32, %v4324_v23  ;;  %v4370_v50 = vshll.u32 %v5505_v39, 16  ;;  %v4339_v51 = vsel %vm6935_vm2, %v4334_v43, %v4338_v26  ;;  %s7557_s11 = scalar_lea.vmem [#allocation2], %s4943_s10 }
 0x132   : > { %v4367_v53 = vor.u32 %v4366_v34, %v4362_v40  ;;  %v5535_v55 = vcombine.low %v4315_v46, %v4325_v48  ;;  %v5536_v57 = vcombine.low %v4339_v51, %v4349_v52  ;;  %s4877_s19 = sshll.u32 %s7557_s11, 4  ;;  %s7631_s19 = int_to_ptr.vmem [resolvable:$true] %s4877_s19 }
 0x133   : > { %v4372_v61 = vrot.slane %v4370_v50, 5  ;;  %s6691_s27 = scalar_lea.vmem %s7631_s19, 4096  ;;  %p6698_p0 = scmp.lt.s32.totalorder %s7631_s19, %s6696_s29 }
 0x134   : > { %v4368_v60 = vrot.slane %v4367_v53, 4  ;;  %p6692_p11 = scmp.ne.s32.totalorder %s7631_s19, %s6691_s27  ;;  %p6699_p1 = scmp.lt.s32.totalorder %s6697_s30, %s6691_s27 }
 0x136   : > { %5998 = vmatmul.mubr.bf16.gmra.mrb[20].mxu1 %v6678_v30  ;;  %v4373_v1 = vsel %vm6935_vm2, %v4368_v60, %v4372_v61  ;;  %p6693_p12 = pnand %p6692_p11, %p6816_p5  ;;  %p6700_p2 = por %p6699_p1, %p6698_p0 }
 0x137   : > { %6001 = vmatprep.mubr.bf16.mxu1 %v6679_v36  ;;  %v5537_v2 = vcombine.low %v4363_v0, %v4373_v1 }
 0x138   : > { %6190 = vmatmul.mubr.bf16.gmra.mrb[20].mxu0 %v5533_v8  ;;  %p6694_p13 = pneg %p6693_p12 }
 0x139   : > { %6193 = vmatprep.mubr.bf16.mxu0 %v5534_v31 }
 0x13a   : > { %p6701_p3 = pnand %p6700_p2, %p6694_p13 }
 0x13e   : > { %6002 = vmatmul.mubr.bf16.gmra.mrb[24].mxu1 %v6680_v56 }
 0x13f   : > { %6005 = vmatprep.mubr.bf16.mxu1 %v6681_v63 }
 0x140   : > { %6194 = vmatmul.mubr.bf16.gmra.mrb[24].mxu0 %v5535_v55 }
 0x141   : > { %6197 = vmatprep.mubr.bf16.mxu0 %v5536_v57 }
 0x146   : > { %6006 = vmatmul.mubr.bf16.gmra.mrb[28].mxu1 %v6682_v3 }
 0x148   : > { %6198 = vmatmul.mubr.bf16.gmra.mrb[28].mxu0 %v5537_v2 }
 0x1c1   : > { %v5931_v4 = vpop.f32.mrb[0].mxu1 }
 0x1c2   : > { %v1868_v5 = vpop.f32.mrb[1].mxu1 }
 0x1c3   : > { %v5932_v54 = vpop.f32.mrb[2].mxu1 }
 0x1c4   : > { %v1871_v6 = vpop.f32.mrb[3].mxu1 }
 0x1c9   : > { %v5935_v7 = vpop.f32.mrb[4].mxu1 }
 0x1ca   : > { %v1884_v8 = vpop.f32.mrb[5].mxu1 }
 0x1cb   : > { %v5936_v9 = vpop.f32.mrb[6].mxu1 }
 0x1cc   : > { %v1887_v10 = vpop.f32.mrb[7].mxu1 }
 0x1d1   : > { %v7529_v11 = vpop.f32.mrb[8].mxu1 }
 0x1d2   : > { %v7531_v12 = vpop.f32.mrb[9].mxu1 }
 0x1d3   : > { %v7533_v58 = vpop.f32.mrb[10].mxu1 }
 0x1d4   : > { %v7535_v13 = vpop.f32.mrb[11].mxu1 }
 0x1d9   : > { %v7537_v62 = vpop.f32.mrb[12].mxu1 }
 0x1da   : > { %v7539_v14 = vpop.f32.mrb[13].mxu1 }
 0x1db   : > { %v7541_v15 = vpop.f32.mrb[14].mxu1 }
 0x1dc   : > { %v7543_v16 = vpop.f32.mrb[15].mxu1 }
 0x1e3   : > { %v6171_v17 = vpop.f32.mrb[0].mxu0 }
 0x1e4   : > { %v6217_v19 = vadd.f32 %v6171_v17, %v5931_v4  ;;  %v4537_v20 = vpop.f32.mrb[1].mxu0 }
 0x1e5   : > { %v6218_v21 = vadd.f32 %v4537_v20, %v1868_v5  ;;  %v6172_v22 = vpop.f32.mrb[2].mxu0 }
 0x1e6   : > { %v4705_v23 = vadd.f32 %v6217_v19, %v7549_v18  ;;  %v6219_v25 = vadd.f32 %v6172_v22, %v5932_v54  ;;  %v4540_v24 = vpop.f32.mrb[3].mxu0 }
 0x1e7   : > { %v4703_v26 = vadd.f32 %v6218_v21, %v7549_v18  ;;  %v6220_v27 = vadd.f32 %v4540_v24, %v1871_v6 }
 0x1e8   : > { %vm4737_vm3 = vcmp.ge.f32.partialorder %v4705_v23, 0.0  ;;  %v4769_v28 = vmul.f32 0.01, %v4705_v23  ;;  %v4706_v29 = vadd.f32 %v6219_v25, %v7549_v18 }
 0x1e9   : > { %vm4735_vm4 = vcmp.ge.f32.partialorder %v4703_v26, 0.0  ;;  %v4767_v30 = vmul.f32 0.01, %v4703_v26  ;;  %v4704_v31 = vadd.f32 %v6220_v27, %v7549_v18 }
 0x1ea   : > { %v4801_v32 = vsel %vm4737_vm3, %v4705_v23, %v4769_v28  ;;  %vm4738_vm5 = vcmp.ge.f32.partialorder %v4706_v29, 0.0  ;;  %v4770_v33 = vmul.f32 0.01, %v4706_v29 }
 0x1eb   : > { %4833 = vst [vmem:[%s7557_s11 + $0x10] sm:$0xff] %v4801_v32  ;;  %v4799_v35 = vsel %vm4735_vm4, %v4703_v26, %v4767_v30  ;;  %vm4736_vm6 = vcmp.ge.f32.partialorder %v4704_v31, 0.0  ;;  %v4768_v36 = vmul.f32 0.01, %v4704_v31  ;;  %v6175_v37 = vpop.f32.mrb[4].mxu0 }
 0x1ec   : > { %4831 = vst [vmem:[%s7557_s11] sm:$0xff] %v4799_v35  ;;  %v4802_v38 = vsel %vm4738_vm5, %v4706_v29, %v4770_v33  ;;  %v6221_v39 = vadd.f32 %v6175_v37, %v5935_v7  ;;  %v4553_v41 = vpop.f32.mrb[5].mxu0 }
 0x1ed   : > { %4834 = vst [vmem:[%s7557_s11 + $0x18] sm:$0xff] %v4802_v38  ;;  %v4800_v42 = vsel %vm4736_vm6, %v4704_v31, %v4768_v36  ;;  %v6222_v43 = vadd.f32 %v4553_v41, %v1884_v8  ;;  %v6176_v44 = vpop.f32.mrb[6].mxu0 }
 0x1ee   : > { %4832 = vst [vmem:[%s7557_s11 + $0x8] sm:$0xff] %v4800_v42  ;;  %v4709_v45 = vadd.f32 %v6221_v39, %v7549_v18  ;;  %v6223_v46 = vadd.f32 %v6176_v44, %v5936_v9  ;;  %v4556_v47 = vpop.f32.mrb[7].mxu0 }
 0x1ef   : > { %v4707_v40 = vadd.f32 %v6222_v43, %v7549_v18  ;;  %v6224_v48 = vadd.f32 %v4556_v47, %v1887_v10 }
 0x1f0   : > { %vm4741_vm7 = vcmp.ge.f32.partialorder %v4709_v45, 0.0  ;;  %v4773_v49 = vmul.f32 0.01, %v4709_v45  ;;  %v4710_v34 = vadd.f32 %v6223_v46, %v7549_v18 }
 0x1f1   : > { %vm4739_vm8 = vcmp.ge.f32.partialorder %v4707_v40, 0.0  ;;  %v4771_v50 = vmul.f32 0.01, %v4707_v40  ;;  %v4708_v51 = vadd.f32 %v6224_v48, %v7549_v18 }
 0x1f2   : > { %v4805_v52 = vsel %vm4741_vm7, %v4709_v45, %v4773_v49  ;;  %vm4742_vm9 = vcmp.ge.f32.partialorder %v4710_v34, 0.0  ;;  %v4774_v53 = vmul.f32 0.01, %v4710_v34 }
 0x1f3   : > { %4837 = vst [vmem:[%s7557_s11 + $0x30] sm:$0xff] %v4805_v52  ;;  %v4803_v55 = vsel %vm4739_vm8, %v4707_v40, %v4771_v50  ;;  %vm4740_vm10 = vcmp.ge.f32.partialorder %v4708_v51, 0.0  ;;  %v4772_v56 = vmul.f32 0.01, %v4708_v51  ;;  %v6179_v57 = vpop.f32.mrb[8].mxu0 }
 0x1f4   : > { %4835 = vst [vmem:[%s7557_s11 + $0x20] sm:$0xff] %v4803_v55  ;;  %v4806_v59 = vsel %vm4742_vm9, %v4710_v34, %v4774_v53  ;;  %v6225_v60 = vadd.f32 %v6179_v57, %v7529_v11  ;;  %v4569_v61 = vpop.f32.mrb[9].mxu0 }
 0x1f5   : > { %4838 = vst [vmem:[%s7557_s11 + $0x38] sm:$0xff] %v4806_v59  ;;  %v4804_v63 = vsel %vm4740_vm10, %v4708_v51, %v4772_v56  ;;  %v6226_v0 = vadd.f32 %v4569_v61, %v7531_v12  ;;  %v6180_v1 = vpop.f32.mrb[10].mxu0 }
 0x1f6   : > { %4836 = vst [vmem:[%s7557_s11 + $0x28] sm:$0xff] %v4804_v63  ;;  %v4713_v2 = vadd.f32 %v6225_v60, %v7549_v18  ;;  %v6227_v3 = vadd.f32 %v6180_v1, %v7533_v58  ;;  %v4572_v4 = vpop.f32.mrb[11].mxu0 }
 0x1f7   : > { %v4711_v5 = vadd.f32 %v6226_v0, %v7549_v18  ;;  %v6228_v54 = vadd.f32 %v4572_v4, %v7535_v13 }
 0x1f8   : > { %vm4745_vm11 = vcmp.ge.f32.partialorder %v4713_v2, 0.0  ;;  %v4777_v6 = vmul.f32 0.01, %v4713_v2  ;;  %v4714_v7 = vadd.f32 %v6227_v3, %v7549_v18 }
 0x1f9   : > { %vm4743_vm12 = vcmp.ge.f32.partialorder %v4711_v5, 0.0  ;;  %v4775_v8 = vmul.f32 0.01, %v4711_v5  ;;  %v4712_v9 = vadd.f32 %v6228_v54, %v7549_v18 }
 0x1fa   : > { %v4809_v10 = vsel %vm4745_vm11, %v4713_v2, %v4777_v6  ;;  %vm4746_vm13 = vcmp.ge.f32.partialorder %v4714_v7, 0.0  ;;  %v4778_v11 = vmul.f32 0.01, %v4714_v7 }
 0x1fb   : > { %4841 = vst [vmem:[%s7557_s11 + $0x50] sm:$0xff] %v4809_v10  ;;  %v4807_v12 = vsel %vm4743_vm12, %v4711_v5, %v4775_v8  ;;  %vm4744_vm14 = vcmp.ge.f32.partialorder %v4712_v9, 0.0  ;;  %v4776_v58 = vmul.f32 0.01, %v4712_v9  ;;  %v6183_v17 = vpop.f32.mrb[12].mxu0 }
 0x1fc   : > { %4839 = vst [vmem:[%s7557_s11 + $0x40] sm:$0xff] %v4807_v12  ;;  %v4810_v13 = vsel %vm4746_vm13, %v4714_v7, %v4778_v11  ;;  %v6229_v19 = vadd.f32 %v6183_v17, %v7537_v62  ;;  %v4585_v20 = vpop.f32.mrb[13].mxu0 }
 0x1fd   : > { %4842 = vst [vmem:[%s7557_s11 + $0x58] sm:$0xff] %v4810_v13  ;;  %v4808_v21 = vsel %vm4744_vm14, %v4712_v9, %v4776_v58  ;;  %v6230_v22 = vadd.f32 %v4585_v20, %v7539_v14  ;;  %v6184_v23 = vpop.f32.mrb[14].mxu0 }
 0x1fe   : > { %4840 = vst [vmem:[%s7557_s11 + $0x48] sm:$0xff] %v4808_v21  ;;  %v4717_v25 = vadd.f32 %v6229_v19, %v7549_v18  ;;  %v6231_v24 = vadd.f32 %v6184_v23, %v7541_v15  ;;  %v4588_v26 = vpop.f32.mrb[15].mxu0 }
 0x1ff   : > { %v4715_v27 = vadd.f32 %v6230_v22, %v7549_v18  ;;  %v6232_v28 = vadd.f32 %v4588_v26, %v7543_v16 }
 0x200   : > { %vm4749_vm15 = vcmp.ge.f32.partialorder %v4717_v25, 0.0  ;;  %v4781_v62 = vmul.f32 0.01, %v4717_v25  ;;  %v4718_v29 = vadd.f32 %v6231_v24, %v7549_v18 }
 0x201   : > { %vm4747_vm0 = vcmp.ge.f32.partialorder %v4715_v27, 0.0  ;;  %v4779_v14 = vmul.f32 0.01, %v4715_v27  ;;  %v4716_v30 = vadd.f32 %v6232_v28, %v7549_v18  ;;  %v5995_v36 = vpop.f32.mrb[16].mxu1 }
 0x202   : > { %v4813_v31 = vsel %vm4749_vm15, %v4717_v25, %v4781_v62  ;;  %vm4750_vm1 = vcmp.ge.f32.partialorder %v4718_v29, 0.0  ;;  %v4782_v32 = vmul.f32 0.01, %v4718_v29  ;;  %v2319_v41 = vpop.f32.mrb[17].mxu1 }
 0x203   : > { %4845 = vst [vmem:[%s7557_s11 + $0x70] sm:$0xff] %v4813_v31  ;;  %v4811_v15 = vsel %vm4747_vm0, %v4715_v27, %v4779_v14  ;;  %vm4748_vm2 = vcmp.ge.f32.partialorder %v4716_v30, 0.0  ;;  %v4780_v33 = vmul.f32 0.01, %v4716_v30  ;;  %v6187_v35 = vpop.f32.mrb[16].mxu0  ;;  %v5996_v44 = vpop.f32.mrb[18].mxu1 }
 0x204   : > { %4843 = vst [vmem:[%s7557_s11 + $0x60] sm:$0xff] %v4811_v15  ;;  %v4814_v16 = vsel %vm4750_vm1, %v4718_v29, %v4782_v32  ;;  %v4601_v37 = vpop.f32.mrb[17].mxu0  ;;  %v6233_v39 = vadd.f32 %v6187_v35, %v5995_v36  ;;  %v2322_v40 = vpop.f32.mrb[19].mxu1 }
 0x205   : > { %4846 = vst [vmem:[%s7557_s11 + $0x78] sm:$0xff] %v4814_v16  ;;  %v4812_v38 = vsel %vm4748_vm2, %v4716_v30, %v4780_v33  ;;  %v6188_v42 = vpop.f32.mrb[18].mxu0  ;;  %v6234_v43 = vadd.f32 %v4601_v37, %v2319_v41 }
 0x206   : > { %4844 = vst [vmem:[%s7557_s11 + $0x68] sm:$0xff] %v4812_v38  ;;  %v4604_v45 = vpop.f32.mrb[19].mxu0  ;;  %v4721_v46 = vadd.f32 %v6233_v39, %v7549_v18  ;;  %v6235_v47 = vadd.f32 %v6188_v42, %v5996_v44 }
 0x207   : > { %v4719_v48 = vadd.f32 %v6234_v43, %v7549_v18  ;;  %v6236_v49 = vadd.f32 %v4604_v45, %v2322_v40 }
 0x208   : > { %vm4753_vm3 = vcmp.ge.f32.partialorder %v4721_v46, 0.0  ;;  %v4785_v34 = vmul.f32 0.01, %v4721_v46  ;;  %v4722_v50 = vadd.f32 %v6235_v47, %v7549_v18 }
 0x209   : > { %vm4751_vm4 = vcmp.ge.f32.partialorder %v4719_v48, 0.0  ;;  %v4783_v51 = vmul.f32 0.01, %v4719_v48  ;;  %v4720_v52 = vadd.f32 %v6236_v49, %v7549_v18  ;;  %v5999_v60 = vpop.f32.mrb[20].mxu1 }
 0x20a   : > { %v4817_v53 = vsel %vm4753_vm3, %v4721_v46, %v4785_v34  ;;  %vm4754_vm5 = vcmp.ge.f32.partialorder %v4722_v50, 0.0  ;;  %v4786_v55 = vmul.f32 0.01, %v4722_v50  ;;  %v2335_v1 = vpop.f32.mrb[21].mxu1 }
 0x20b   : > { %v6191_v56 = vpop.f32.mrb[20].mxu0  ;;  %4849 = vst [vmem:[%s7557_s11 + $0x90] sm:$0xff] %v4817_v53  ;;  %v4815_v57 = vsel %vm4751_vm4, %v4719_v48, %v4783_v51  ;;  %vm4752_vm6 = vcmp.ge.f32.partialorder %v4720_v52, 0.0  ;;  %v4784_v59 = vmul.f32 0.01, %v4720_v52  ;;  %v6000_v5 = vpop.f32.mrb[22].mxu1 }
 0x20c   : > { %v4617_v61 = vpop.f32.mrb[21].mxu0  ;;  %4847 = vst [vmem:[%s7557_s11 + $0x80] sm:$0xff] %v4815_v57  ;;  %v4818_v63 = vsel %vm4754_vm5, %v4722_v50, %v4786_v55  ;;  %v6237_v0 = vadd.f32 %v6191_v56, %v5999_v60  ;;  %v2338_v8 = vpop.f32.mrb[23].mxu1 }
 0x20d   : > { %v6192_v2 = vpop.f32.mrb[22].mxu0  ;;  %4850 = vst [vmem:[%s7557_s11 + $0x98] sm:$0xff] %v4818_v63  ;;  %v4816_v3 = vsel %vm4752_vm6, %v4720_v52, %v4784_v59  ;;  %v6238_v4 = vadd.f32 %v4617_v61, %v2335_v1 }
 0x20e   : > { %v4620_v54 = vpop.f32.mrb[23].mxu0  ;;  %4848 = vst [vmem:[%s7557_s11 + $0x88] sm:$0xff] %v4816_v3  ;;  %v4725_v6 = vadd.f32 %v6237_v0, %v7549_v18  ;;  %v6239_v7 = vadd.f32 %v6192_v2, %v6000_v5 }
 0x20f   : > { %v4723_v9 = vadd.f32 %v6238_v4, %v7549_v18  ;;  %v6240_v10 = vadd.f32 %v4620_v54, %v2338_v8 }
 0x210   : > { %vm4757_vm7 = vcmp.ge.f32.partialorder %v4725_v6, 0.0  ;;  %v4789_v11 = vmul.f32 0.01, %v4725_v6  ;;  %v4726_v12 = vadd.f32 %v6239_v7, %v7549_v18 }
 0x211   : > { %vm4755_vm8 = vcmp.ge.f32.partialorder %v4723_v9, 0.0  ;;  %v4787_v58 = vmul.f32 0.01, %v4723_v9  ;;  %v4724_v17 = vadd.f32 %v6240_v10, %v7549_v18  ;;  %v6003_v23 = vpop.f32.mrb[24].mxu1 }
 0x212   : > { %v4821_v13 = vsel %vm4757_vm7, %v4725_v6, %v4789_v11  ;;  %vm4758_vm9 = vcmp.ge.f32.partialorder %v4726_v12, 0.0  ;;  %v4790_v19 = vmul.f32 0.01, %v4726_v12  ;;  %v2351_v27 = vpop.f32.mrb[25].mxu1 }
 0x213   : > { %v6195_v20 = vpop.f32.mrb[24].mxu0  ;;  %4853 = vst [vmem:[%s7557_s11 + $0xb0] sm:$0xff] %v4821_v13  ;;  %v4819_v21 = vsel %vm4755_vm8, %v4723_v9, %v4787_v58  ;;  %vm4756_vm10 = vcmp.ge.f32.partialorder %v4724_v17, 0.0  ;;  %v4788_v22 = vmul.f32 0.01, %v4724_v17  ;;  %v6004_v14 = vpop.f32.mrb[26].mxu1 }
 0x214   : > { %v4633_v25 = vpop.f32.mrb[25].mxu0  ;;  %4851 = vst [vmem:[%s7557_s11 + $0xa0] sm:$0xff] %v4819_v21  ;;  %v4822_v24 = vsel %vm4758_vm9, %v4726_v12, %v4790_v19  ;;  %v6241_v26 = vadd.f32 %v6195_v20, %v6003_v23  ;;  %v2354_v15 = vpop.f32.mrb[27].mxu1 }
 0x215   : > { %v6196_v28 = vpop.f32.mrb[26].mxu0  ;;  %4854 = vst [vmem:[%s7557_s11 + $0xb8] sm:$0xff] %v4822_v24  ;;  %v4820_v62 = vsel %vm4756_vm10, %v4724_v17, %v4788_v22  ;;  %v6242_v29 = vadd.f32 %v4633_v25, %v2351_v27 }
 0x216   : > { %v4636_v30 = vpop.f32.mrb[27].mxu0  ;;  %4852 = vst [vmem:[%s7557_s11 + $0xa8] sm:$0xff] %v4820_v62  ;;  %v4729_v31 = vadd.f32 %v6241_v26, %v7549_v18  ;;  %v6243_v32 = vadd.f32 %v6196_v28, %v6004_v14 }
 0x217   : > { %v4727_v33 = vadd.f32 %v6242_v29, %v7549_v18  ;;  %v6244_v35 = vadd.f32 %v4636_v30, %v2354_v15 }
 0x218   : > { %vm4761_vm11 = vcmp.ge.f32.partialorder %v4729_v31, 0.0  ;;  %v4793_v16 = vmul.f32 0.01, %v4729_v31  ;;  %v4730_v36 = vadd.f32 %v6243_v32, %v7549_v18 }
 0x219   : > { %vm4759_vm12 = vcmp.ge.f32.partialorder %v4727_v33, 0.0  ;;  %v4791_v37 = vmul.f32 0.01, %v4727_v33  ;;  %v4728_v38 = vadd.f32 %v6244_v35, %v7549_v18  ;;  %v6007_v45 = vpop.f32.mrb[28].mxu1 }
 0x21a   : > { %v4825_v39 = vsel %vm4761_vm11, %v4729_v31, %v4793_v16  ;;  %vm4762_vm13 = vcmp.ge.f32.partialorder %v4730_v36, 0.0  ;;  %v4794_v41 = vmul.f32 0.01, %v4730_v36  ;;  %v2367_v48 = vpop.f32.mrb[29].mxu1 }
 0x21b   : > { %v6199_v42 = vpop.f32.mrb[28].mxu0  ;;  %4857 = vst [vmem:[%s7557_s11 + $0xd0] sm:$0xff] %v4825_v39  ;;  %v4823_v43 = vsel %vm4759_vm12, %v4727_v33, %v4791_v37  ;;  %vm4760_vm14 = vcmp.ge.f32.partialorder %v4728_v38, 0.0  ;;  %v4792_v44 = vmul.f32 0.01, %v4728_v38  ;;  %v6008_v51 = vpop.f32.mrb[30].mxu1 }
 0x21c   : > { %v4649_v46 = vpop.f32.mrb[29].mxu0  ;;  %4855 = vst [vmem:[%s7557_s11 + $0xc0] sm:$0xff] %v4823_v43  ;;  %v4826_v47 = vsel %vm4762_vm13, %v4730_v36, %v4794_v41  ;;  %v6245_v40 = vadd.f32 %v6199_v42, %v6007_v45  ;;  %v2370_v56 = vpop.f32.mrb[31].mxu1 }
 0x21d   : > { %v6200_v49 = vpop.f32.mrb[30].mxu0  ;;  %4858 = vst [vmem:[%s7557_s11 + $0xd8] sm:$0xff] %v4826_v47  ;;  %v4824_v34 = vsel %vm4760_vm14, %v4728_v38, %v4792_v44  ;;  %v6246_v50 = vadd.f32 %v4649_v46, %v2367_v48 }
 0x21e   : > { %v4652_v52 = vpop.f32.mrb[31].mxu0  ;;  %4856 = vst [vmem:[%s7557_s11 + $0xc8] sm:$0xff] %v4824_v34  ;;  %v4733_v53 = vadd.f32 %v6245_v40, %v7549_v18  ;;  %v6247_v55 = vadd.f32 %v6200_v49, %v6008_v51 }
 0x21f   : > { %v4731_v57 = vadd.f32 %v6246_v50, %v7549_v18  ;;  %v6248_v59 = vadd.f32 %v4652_v52, %v2370_v56 }
 0x220   : > { %vm4765_vm15 = vcmp.ge.f32.partialorder %v4733_v53, 0.0  ;;  %v4797_v60 = vmul.f32 0.01, %v4733_v53  ;;  %v4734_v61 = vadd.f32 %v6247_v55, %v7549_v18 }
 0x221   : > { %vm4763_vm0 = vcmp.ge.f32.partialorder %v4731_v57, 0.0  ;;  %v4795_v63 = vmul.f32 0.01, %v4731_v57  ;;  %v4732_v0 = vadd.f32 %v6248_v59, %v7549_v18 }
 0x222   : > { %v4829_v1 = vsel %vm4765_vm15, %v4733_v53, %v4797_v60  ;;  %vm4766_vm1 = vcmp.ge.f32.partialorder %v4734_v61, 0.0  ;;  %v4798_v2 = vmul.f32 0.01, %v4734_v61 }
 0x223   : > { %4861 = vst [vmem:[%s7557_s11 + $0xf0] sm:$0xff] %v4829_v1  ;;  %v4827_v3 = vsel %vm4763_vm0, %v4731_v57, %v4795_v63  ;;  %vm4764_vm2 = vcmp.ge.f32.partialorder %v4732_v0, 0.0  ;;  %v4796_v4 = vmul.f32 0.01, %v4732_v0 }
 0x224   : > { %4859 = vst [vmem:[%s7557_s11 + $0xe0] sm:$0xff] %v4827_v3  ;;  %v4830_v18 = vsel %vm4766_vm1, %v4734_v61, %v4798_v2 }
 0x225   : > { %4862 = vst [vmem:[%s7557_s11 + $0xf8] sm:$0xff] %v4830_v18  ;;  %v4828_v5 = vsel %vm4764_vm2, %v4732_v0, %v4796_v4 }
 0x226   : > { %4860 = vst [vmem:[%s7557_s11 + $0xe8] sm:$0xff] %v4828_v5 }
 0x227   : > { %6704 = shalt.err (!%p6701_p3)
}
 0x228   : > { %s6705_s5 = scalar_lea.hbm %s7629_s16, 4096  ;;  %s6709_s7 = scalar_lea.hbm %s7682_s3, 8192 }
 0x229   : > { %p6706_p4 = scmp.ne.s32.totalorder %s7629_s16, %s6705_s5  ;;  %p6710_p9 = scmp.lt.u32.totalorder %s7629_s16, %s7682_s3 }
 0x22a   : > { %p6711_p10 = scmp.lt.u32.totalorder %s6709_s7, %s6705_s5  ;;  %p6713_p12 = scmp.lt.u32.totalorder %s6705_s5, %s7629_s16 }
 0x22b   : > { %p6707_p7 = pnand %p6706_p4, %p6816_p5 }
 0x22c   : > { %p6712_p11 = por %p6711_p10, %p6710_p9 }
 0x22d   : > { %p6708_p8 = pneg %p6707_p7 }
 0x22e   : > { %p6714_p13 = por %p6713_p12, %p6712_p11 }
 0x230   : > { %p6715_p0 = pnand %p6714_p13, %p6708_p8 }
 0x232   : > { %6718 = shalt.err (!%p6715_p0)
}
 0x233   : > { %s6756_s9 = smov 128   ;;  %s6757_s10 = smov 8  }
 0x234   : > { %6474 = dma.vmem_to_hbm [thread:$0]  (%p6816_p5), %s7631_s19, 4096, %s7629_s16, %s7638_s25, %s6756_s9, %s6756_s9, %s6757_s10  }
 0x235 PF: > { %p6480_p1 = scmp.ge.s32.totalorder %s6753_s15, 2  ;;  %s4892_s11 = sand.u32 1, %s6741_s12  }
 0x236   : > { %s4893_s17 = scalar_lea.sflag [#allocation3], %s4892_s11 }
 0x237   : > { %p6477_p2 = pnand %p6480_p1, %p6820_p6 }
 0x239   : > { %6736 = dma.done.wait (!%p6477_p2), %s4893_s17, 4096  }
 0x23a   : > { %6738 = vsyncadd (!%p6477_p2), %s4893_s17, 4294963200  ;;  %p13_p3 = scmp.ge.s32.totalorder %s6803_s18, 4   ;;  %s7687_s12 = smov %s6745_s13 }
 0x23b   : > { %s7688_s13 = smov %s6749_s14  ;;  %s7689_s14 = smov %s6814_s21 }
 0x23c   : > { %s7690_s15 = smov %s6803_s18  ;;  %15 = sbr.rel (!%p13_p3) target bundleno = 3 (0x3), region = 80 }
 0x243   :  { %4898 = vsyncpa [#allocation3], 1 }
 0x244   :  { %4900 = vsyncpa [#allocation3 + $0x1], 1 }

</bundles_post_ra>
